<compile_context>
chip_gen: v5e
topology: v5e:2x2
jax: 0.10.0
libtpu: 0.0.40
codegen_flags: <defaults>
</compile_context>

<pallas_src>
import functools
import math

import jax
import jax.numpy as jnp
from jax import lax
from jax.experimental import pallas as pl
from jax.experimental.pallas import tpu as pltpu


# ----------------------------- helpers -------------------------------------

def _round_up(x, m):
    return (x + m - 1) // m * m


def _pick_tile(dim, target, align):
    """Largest multiple of `align` that divides `dim` and is <= target;
    falls back to the full dimension (always a legal block)."""
    if dim <= target:
        return dim
    t = (target // align) * align
    while t >= align:
        if dim % t == 0:
            return t
        t -= align
    return dim


@functools.lru_cache(maxsize=None)
def _vmem_capacity():
    try:
        cap = getattr(pltpu.get_tpu_info(), "vmem_capacity_bytes", None)
        if cap:
            return int(cap)
    except Exception:
        pass
    return 64 * 1024 * 1024          # conservative default: v7x per-TC VMEM


def _vmem_limit():
    return min(int(_vmem_capacity() * 3 // 4), 96 * 1024 * 1024)


def _gemm_tile_targets():
    # Bigger M tiles when the chip has 128 MiB VMEM (v5e/v6e); v7x stays at 512.
    big = _vmem_capacity() >= 100 * 1024 * 1024
    return (1024 if big else 512, 1024, 512)     # (tm, tn, tk) targets


def _apply_activation(y, activation):
    if activation == "tanh":
        return jnp.tanh(y)
    if activation == "gelu":
        # tanh-approx GELU: transcendental goes to the EUP slot instead of a
        # long exact-erf f32 VALU polynomial in the GEMM epilogue.
        # TODO(synk): reference model uses exact erf GELU; small numeric delta.
        c = math.sqrt(2.0 / math.pi)
        return 0.5 * y * (1.0 + jnp.tanh(c * (y + 0.044715 * y * y * y)))
    return y


# ----------------------------- GEMM kernels ---------------------------------

def _linear_kernel(x_ref, w_ref, b_ref, o_ref, acc_ref, *, activation):
    """One (tm, tn) output tile; K is the last ("arbitrary") grid axis."""
    @pl.when(pl.program_id(2) == 0)
    def _():
        acc_ref[...] = jnp.zeros_like(acc_ref)

    acc_ref[...] += jnp.dot(x_ref[...].astype(jnp.bfloat16), w_ref[...],
                            preferred_element_type=jnp.float32)

    @pl.when(pl.program_id(2) == pl.num_programs(2) - 1)
    def _():
        y = _apply_activation(acc_ref[...] + b_ref[...], activation)
        o_ref[...] = y.astype(o_ref.dtype)


def linear(x, w, b, activation=None, out_dtype=jnp.float32):
    """x: (M, K) any float; w: (K, N) bf16; b: (N,) f32 -> (M, N) out_dtype."""
    M, K = x.shape
    N = w.shape[1]
    tmt, tnt, tkt = _gemm_tile_targets()
    tm = _pick_tile(M, tmt, 16)
    tn = _pick_tile(N, tnt, 128)
    tk = _pick_tile(K, tkt, 128)
    grid = (M // tm, N // tn, K // tk)
    return pl.pallas_call(
        functools.partial(_linear_kernel, activation=activation),
        out_shape=jax.ShapeDtypeStruct((M, N), out_dtype),
        grid=grid,
        in_specs=[pl.BlockSpec((tm, tk), lambda i, j, k: (i, k)),
                  pl.BlockSpec((tk, tn), lambda i, j, k: (k, j)),
                  pl.BlockSpec((1, tn), lambda i, j, k: (0, j))],
        out_specs=pl.BlockSpec((tm, tn), lambda i, j, k: (i, j)),
        scratch_shapes=[pltpu.VMEM((tm, tn), jnp.float32)],
        compiler_params=pltpu.CompilerParams(
            dimension_semantics=("parallel", "parallel", "arbitrary"),
            vmem_limit_bytes=_vmem_limit()),
    )(x, w.astype(jnp.bfloat16), b.astype(jnp.float32).reshape(1, N))


# ------------------------ LayerNorm (+ fused GEMM) ---------------------------

def _ln_core(h, g, b, eps):
    u = jnp.mean(h, axis=-1, keepdims=True)
    s = jnp.mean(jnp.square(h - u), axis=-1, keepdims=True)
    return (h - u) * lax.rsqrt(s + eps) * g + b


def _ln_kernel(x_ref, g_ref, b_ref, o_ref, *, eps):
    o_ref[...] = _ln_core(x_ref[...].astype(jnp.float32),
                          g_ref[...], b_ref[...], eps)


def layernorm(x, gamma, beta, eps=1e-12):
    """LayerNorm(x) over the last dim; x: (M, D) -> (M, D) f32."""
    M, D = x.shape
    tm = _pick_tile(M, 512, 8)
    return pl.pallas_call(
        functools.partial(_ln_kernel, eps=eps),
        out_shape=jax.ShapeDtypeStruct((M, D), jnp.float32),
        grid=(M // tm,),
        in_specs=[pl.BlockSpec((tm, D), lambda i: (i, 0)),
                  pl.BlockSpec((1, D), lambda i: (0, 0)),
                  pl.BlockSpec((1, D), lambda i: (0, 0))],
        out_specs=pl.BlockSpec((tm, D), lambda i: (i, 0)),
        compiler_params=pltpu.CompilerParams(
            dimension_semantics=("parallel",),
            vmem_limit_bytes=_vmem_limit()),
    )(x, gamma.reshape(1, D), beta.reshape(1, D))


def _linear_add_ln_kernel(x_ref, w_ref, b_ref, r_ref, g_ref, bn_ref,
                          o_ref, acc_ref, *, eps):
    """Fused y = LayerNorm(residual + x @ w + b); full N row held in-tile."""
    @pl.when(pl.program_id(1) == 0)
    def _():
        acc_ref[...] = jnp.zeros_like(acc_ref)

    acc_ref[...] += jnp.dot(x_ref[...].astype(jnp.bfloat16), w_ref[...],
                            preferred_element_type=jnp.float32)

    @pl.when(pl.program_id(1) == pl.num_programs(1) - 1)
    def _():
        h = acc_ref[...] + b_ref[...] + r_ref[...]
        o_ref[...] = _ln_core(h, g_ref[...], bn_ref[...], eps).astype(o_ref.dtype)


def linear_add_ln(x, w, b, residual, gamma, beta, eps=1e-12):
    """LayerNorm(residual + x @ w + b); w: (K, N); residual: (M, N) f32."""
    M, K = x.shape
    N = w.shape[1]
    tmt, _, tkt = _gemm_tile_targets()
    tm = _pick_tile(M, tmt, 16)
    tk = _pick_tile(K, tkt, 128)
    grid = (M // tm, K // tk)
    return pl.pallas_call(
        functools.partial(_linear_add_ln_kernel, eps=eps),
        out_shape=jax.ShapeDtypeStruct((M, N), jnp.float32),
        grid=grid,
        in_specs=[pl.BlockSpec((tm, tk), lambda i, k: (i, k)),
                  pl.BlockSpec((tk, N), lambda i, k: (k, 0)),
                  pl.BlockSpec((1, N), lambda i, k: (0, 0)),
                  pl.BlockSpec((tm, N), lambda i, k: (i, 0)),
                  pl.BlockSpec((1, N), lambda i, k: (0, 0)),
                  pl.BlockSpec((1, N), lambda i, k: (0, 0))],
        out_specs=pl.BlockSpec((tm, N), lambda i, k: (i, 0)),
        scratch_shapes=[pltpu.VMEM((tm, N), jnp.float32)],
        compiler_params=pltpu.CompilerParams(
            dimension_semantics=("parallel", "arbitrary"),
            vmem_limit_bytes=_vmem_limit()),
    )(x, w.astype(jnp.bfloat16), b.astype(jnp.float32).reshape(1, N),
      residual, gamma.reshape(1, N), beta.reshape(1, N))


# ------------------------------- attention -----------------------------------

def _heads_per_block(n_heads, d_head):
    """Smallest head group whose output width is lane-aligned (128-multiple);
    fall back to all heads (full-D block, always a legal BlockSpec)."""
    for hb in range(1, n_heads + 1):
        if n_heads % hb == 0 and (hb * d_head) % 128 == 0:
            return hb
    return n_heads


def _attn_kernel(qkv_ref, m_ref, o_ref, *, hb, d_head, scale):
    """One batch element x one head group. qkv layout per head: [q|k|v]."""
    neg = -10000.0 * (1.0 - m_ref[0])              # (1, S): 1 = keep, 0 = pad
    ctxs = []
    for i in range(hb):                            # small static unroll (hb<=H)
        base = i * 3 * d_head
        q = qkv_ref[0, :, base:base + d_head]                       # (S, Dh) bf16
        k = qkv_ref[0, :, base + d_head:base + 2 * d_head]
        v = qkv_ref[0, :, base + 2 * d_head:base + 3 * d_head]
        s = lax.dot_general(q, k, (((1,), (1,)), ((), ())),
                            preferred_element_type=jnp.float32) * scale
        s = s + neg
        s = s - jnp.max(s, axis=-1, keepdims=True)
        p = jnp.exp(s)
        p = p * pl.reciprocal(jnp.sum(p, axis=-1, keepdims=True), approx=True)
        ctxs.append(jnp.dot(p.astype(v.dtype), v,
                            preferred_element_type=jnp.float32))
    # Single lane-dense store of all heads in this group.
    o_ref[0] = jnp.concatenate(ctxs, axis=-1).astype(o_ref.dtype)


def attention(qkv, mask, n_heads, d_head, scale):
    """qkv: (B, S, 3D) bf16 head-major [q_h|k_h|v_h per head]; mask: (B,1,S) f32
    -> context (B, S, D) bf16 with heads concatenated along the last dim."""
    B, S, _ = qkv.shape
    D = n_heads * d_head
    hb = _heads_per_block(n_heads, d_head)
    G = n_heads // hb
    return pl.pallas_call(
        functools.partial(_attn_kernel, hb=hb, d_head=d_head, scale=scale),
        out_shape=jax.ShapeDtypeStruct((B, S, D), jnp.bfloat16),
        grid=(B, G),
        in_specs=[pl.BlockSpec((1, S, hb * 3 * d_head), lambda b, g: (b, 0, g)),
                  pl.BlockSpec((1, 1, S), lambda b, g: (b, 0, 0))],
        out_specs=pl.BlockSpec((1, S, hb * d_head), lambda b, g: (b, 0, g)),
        compiler_params=pltpu.CompilerParams(
            dimension_semantics=("parallel", "parallel"),
            vmem_limit_bytes=_vmem_limit()),
    )(qkv, mask)


# ------------------------------- parameters ----------------------------------

def init_params(key, cfg):
    D, V, F = cfg["dim"], cfg["vocab_size"], cfg["dim_ff"]
    P, SEG, L, H = (cfg["max_len"], cfg["n_segments"], cfg["n_layers"],
                    cfg["n_heads"])
    Dh = D // H
    keys = iter(jax.random.split(key, 16 + 16 * L))

    def w(shape, dtype=jnp.bfloat16):
        # GEMM weights stored bf16 in (K, N) = (in, out) layout (MXU-native);
        # embeddings / biases / LN params stay f32.
        return (0.02 * jax.random.normal(next(keys), shape,
                                         jnp.float32)).astype(dtype)

    zeros = lambda n: jnp.zeros((n,), jnp.float32)
    ones = lambda n: jnp.ones((n,), jnp.float32)

    tok_embed = w((V, D), jnp.float32)
    # Tied LM decoder: bf16 (D, V_pad) copy of the embedding table; vocab padded
    # to a multiple of 512 so the vocab GEMM keeps lane-sized tn tiles.
    V_pad = _round_up(V, 512)
    dec_w = jnp.zeros((D, V_pad), jnp.bfloat16).at[:, :V].set(
        tok_embed.T.astype(jnp.bfloat16))

    params = {
        "tok_embed": tok_embed,
        "pos_embed": w((P, D), jnp.float32),
        "seg_embed": w((SEG, D), jnp.float32),
        "embed_norm_g": ones(D), "embed_norm_b": zeros(D),
        "layers": [],
        # heads of BertModel4Pretrain
        "fc_w": w((D, D)), "fc_b": zeros(D),              # pooler fc
        "linear_w": w((D, D)), "linear_b": zeros(D),      # masked-LM transform
        "norm_g": ones(D), "norm_b": zeros(D),            # masked-LM LayerNorm
        "clsf_w": w((D, 2)), "clsf_b": zeros(2),          # NSP classifier
        "decoder_w": dec_w,                               # tied, padded, bf16
        "decoder_bias": jnp.zeros((V_pad,), jnp.float32), # tied decoder bias
    }
    for _ in range(L):
        wq, wk, wv = w((D, D)), w((D, D)), w((D, D))
        # head-major fused QKV: output columns ordered [q_h0|k_h0|v_h0|q_h1|...]
        w_qkv = jnp.stack([wq.reshape(D, H, Dh),
                           wk.reshape(D, H, Dh),
                           wv.reshape(D, H, Dh)], axis=2).reshape(D, 3 * D)
        params["layers"].append({
            "w_qkv": w_qkv, "b_qkv": zeros(3 * D),
            "wo": w((D, D)), "bo": zeros(D),
            "ln1_g": ones(D), "ln1_b": zeros(D),
            "w1": w((D, F)), "b1": zeros(F),
            "w2": w((F, D)), "b2": zeros(D),
            "ln2_g": ones(D), "ln2_b": zeros(D),
        })
    return params


# ------------------------------ forward pass ---------------------------------

def bert_pretrain_forward(params, cfg, input_ids, segment_ids, input_mask,
                          masked_pos):
    B, S = input_ids.shape
    D, H, V = cfg["dim"], cfg["n_heads"], cfg["vocab_size"]
    Dh = D // H
    M = B * S
    scale = 1.0 / math.sqrt(Dh)

    # ---- Embeddings (gathers in JAX glue, LayerNorm in Pallas) ----
    pos = jnp.broadcast_to(jnp.arange(S, dtype=jnp.int32)[None, :], (B, S))
    e = (params["tok_embed"][input_ids]
         + params["pos_embed"][pos]
         + params["seg_embed"][segment_ids])                       # (B, S, D)
    h = layernorm(e.reshape(M, D),
                  params["embed_norm_g"], params["embed_norm_b"])
    # TODO(synk): dropout layers are identity here (eval semantics).

    mask_b = input_mask.astype(jnp.float32).reshape(B, 1, S)       # 1=keep 0=pad

    # ---- Transformer blocks ----
    for lp in params["layers"]:
        qkv = linear(h, lp["w_qkv"], lp["b_qkv"],
                     out_dtype=jnp.bfloat16)                       # (M, 3D) bf16
        ctx = attention(qkv.reshape(B, S, 3 * D), mask_b, H, Dh, scale)
        h = linear_add_ln(ctx.reshape(M, D), lp["wo"], lp["bo"], h,
                          lp["ln1_g"], lp["ln1_b"])                # (M, D) f32
        ff1 = linear(h, lp["w1"], lp["b1"], activation="gelu",
                     out_dtype=jnp.bfloat16)                       # (M, F) bf16
        h = linear_add_ln(ff1, lp["w2"], lp["b2"], h,
                          lp["ln2_g"], lp["ln2_b"])                # (M, D) f32
    h3 = h.reshape(B, S, D)

    # ---- pooled_h = tanh(fc(h[:, 0])) ----
    pooled_h = linear(h3[:, 0, :], params["fc_w"], params["fc_b"],
                      activation="tanh")                           # (B, D) f32

    # ---- masked-LM head ----
    n_pred = masked_pos.shape[1]
    h_masked = jnp.take_along_axis(
        h3, masked_pos[:, :, None].astype(jnp.int32), axis=1)      # (B, n_pred, D)
    hm = linear(h_masked.reshape(B * n_pred, D),
                params["linear_w"], params["linear_b"], activation="gelu")
    hm = layernorm(hm, params["norm_g"], params["norm_b"])
    # Tied decoder (bf16, vocab-padded); slice padded logits back to V.
    logits_lm = linear(hm, params["decoder_w"], params["decoder_bias"])
    logits_lm = logits_lm[:, :V].reshape(B, n_pred, V)             # (B, n_pred, V)

    # ---- NSP classifier ----
    logits_clsf = linear(pooled_h, params["clsf_w"], params["clsf_b"])  # (B, 2)
    return logits_lm, logits_clsf


# ---------------------------------- main --------------------------------------

if __name__ == "__main__":
    cfg = dict(dim=32, n_layers=2, n_heads=4, dim_ff=64,
               vocab_size=64, max_len=16, n_segments=2)
    B, S, n_pred = 2, 8, 4

    key = jax.random.PRNGKey(0)
    kp, k1, k2, k3 = jax.random.split(key, 4)
    params = init_params(kp, cfg)

    input_ids = jax.random.randint(k1, (B, S), 0, cfg["vocab_size"],
                                   dtype=jnp.int32)
    segment_ids = jax.random.randint(k2, (B, S), 0, cfg["n_segments"],
                                     dtype=jnp.int32)
    input_mask = jnp.concatenate([jnp.ones((B, 6), jnp.int32),
                                  jnp.zeros((B, 2), jnp.int32)], axis=1)
    masked_pos = jax.random.randint(k3, (B, n_pred), 0, 6, dtype=jnp.int32)

    fwd = jax.jit(functools.partial(bert_pretrain_forward, params, cfg))
    logits_lm, logits_clsf = fwd(input_ids, segment_ids, input_mask, masked_pos)
    jax.block_until_ready((logits_lm, logits_clsf))

    assert logits_lm.shape == (B, n_pred, cfg["vocab_size"])
    assert logits_lm.dtype == jnp.float32
    assert logits_clsf.shape == (B, 2)
    assert logits_clsf.dtype == jnp.float32
    print("KERNEL_OK")
</pallas_src>

<mosaic_0001>
module attributes {stable_mosaic.version = 11 : i64} {
  func.func @_attn_kernel(%arg0: i32, %arg1: i32, %arg2: memref<1x8x96xbf16, #tpu.memory_space<vmem>>, %arg3: memref<1x1x8xf32, #tpu.memory_space<vmem>>, %arg4: memref<1x8x32xbf16, #tpu.memory_space<vmem>>) attributes {dimension_semantics = [#tpu.dimension_semantics<parallel>, #tpu.dimension_semantics<parallel>], iteration_bounds = array<i64: 2, 1>, scalar_prefetch = 0 : i64, scratch_operands = 0 : i64, tpu.core_type = #tpu.core_type<tc>, window_params = [{transform_indices = @transform_0, window_bounds = array<i64: 1, 8, 96>}, {transform_indices = @transform_1, window_bounds = array<i64: 1, 1, 8>}, {transform_indices = @transform_2, window_bounds = array<i64: 1, 8, 32>}]} {
    %c0 = arith.constant 0 : index
    %c0_0 = arith.constant 0 : index
    %c0_1 = arith.constant 0 : index
    %0 = vector.load %arg3[%c0, %c0_0, %c0_1] : memref<1x1x8xf32, #tpu.memory_space<vmem>>, vector<1x1x8xf32>
    %1 = vector.shape_cast %0 : vector<1x1x8xf32> to vector<1x8xf32>
    %cst = arith.constant 1.000000e+00 : f32
    %2 = vector.broadcast %cst : f32 to vector<1x8xf32>
    %3 = arith.subf %2, %1 : vector<1x8xf32>
    %cst_2 = arith.constant -1.000000e+04 : f32
    %4 = vector.broadcast %cst_2 : f32 to vector<1x8xf32>
    %5 = arith.mulf %4, %3 : vector<1x8xf32>
    %c0_3 = arith.constant 0 : index
    %c0_4 = arith.constant 0 : index
    %c0_5 = arith.constant 0 : index
    %6 = vector.load %arg2[%c0_3, %c0_4, %c0_5] : memref<1x8x96xbf16, #tpu.memory_space<vmem>>, vector<1x8x8xbf16>
    %7 = vector.shape_cast %6 : vector<1x8x8xbf16> to vector<8x8xbf16>
    %c0_6 = arith.constant 0 : index
    %c0_7 = arith.constant 0 : index
    %c8 = arith.constant 8 : index
    %8 = vector.load %arg2[%c0_6, %c0_7, %c8] : memref<1x8x96xbf16, #tpu.memory_space<vmem>>, vector<1x8x8xbf16>
    %9 = vector.shape_cast %8 : vector<1x8x8xbf16> to vector<8x8xbf16>
    %c0_8 = arith.constant 0 : index
    %c0_9 = arith.constant 0 : index
    %c16 = arith.constant 16 : index
    %10 = vector.load %arg2[%c0_8, %c0_9, %c16] : memref<1x8x96xbf16, #tpu.memory_space<vmem>>, vector<1x8x8xbf16>
    %11 = vector.shape_cast %10 : vector<1x8x8xbf16> to vector<8x8xbf16>
    %cst_10 = arith.constant dense<0.000000e+00> : vector<8x8xf32>
    %12 = tpu.matmul %7, %9, %cst_10 {dimension_numbers = #tpu.dot_dimension_numbers<[1], [1], [0], [0], [0, 0, 1, 0], [], []>} : vector<8x8xbf16>, vector<8x8xbf16>, vector<8x8xf32> -> vector<8x8xf32>
    %cst_11 = arith.constant 0.353553385 : f32
    %13 = vector.broadcast %cst_11 : f32 to vector<8x8xf32>
    %14 = arith.mulf %12, %13 : vector<8x8xf32>
    %15 = vector.broadcast %5 : vector<1x8xf32> to vector<8x8xf32>
    %16 = arith.addf %14, %15 : vector<8x8xf32>
    %cst_12 = arith.constant dense<0xFF800000> : vector<8xf32>
    %17 = vector.multi_reduction <maximumf>, %16, %cst_12 [1] : vector<8x8xf32> to vector<8xf32>
    %18 = vector.shape_cast %17 : vector<8xf32> to vector<8x1xf32>
    %19 = vector.broadcast %18 : vector<8x1xf32> to vector<8x8xf32>
    %20 = arith.subf %16, %19 : vector<8x8xf32>
    %21 = math.exp %20 : vector<8x8xf32>
    %cst_13 = arith.constant dense<0.000000e+00> : vector<8xf32>
    %22 = vector.multi_reduction <add>, %21, %cst_13 [1] : vector<8x8xf32> to vector<8xf32>
    %23 = vector.shape_cast %22 : vector<8xf32> to vector<8x1xf32>
    %24 = tpu.reciprocal %23 {approx = true} : vector<8x1xf32> -> vector<8x1xf32>
    %25 = vector.broadcast %24 : vector<8x1xf32> to vector<8x8xf32>
    %26 = arith.mulf %21, %25 : vector<8x8xf32>
    %27 = arith.truncf %26 : vector<8x8xf32> to vector<8x8xbf16>
    %cst_14 = arith.constant dense<0.000000e+00> : vector<8x8xf32>
    %28 = tpu.matmul %27, %11, %cst_14 {dimension_numbers = #tpu.dot_dimension_numbers<[1], [0], [0], [1], [0, 0, 1, 1], [], []>} : vector<8x8xbf16>, vector<8x8xbf16>, vector<8x8xf32> -> vector<8x8xf32>
    %c0_15 = arith.constant 0 : index
    %c0_16 = arith.constant 0 : index
    %c24 = arith.constant 24 : index
    %29 = vector.load %arg2[%c0_15, %c0_16, %c24] : memref<1x8x96xbf16, #tpu.memory_space<vmem>>, vector<1x8x8xbf16>
    %30 = vector.shape_cast %29 : vector<1x8x8xbf16> to vector<8x8xbf16>
    %c0_17 = arith.constant 0 : index
    %c0_18 = arith.constant 0 : index
    %c32 = arith.constant 32 : index
    %31 = vector.load %arg2[%c0_17, %c0_18, %c32] : memref<1x8x96xbf16, #tpu.memory_space<vmem>>, vector<1x8x8xbf16>
    %32 = vector.shape_cast %31 : vector<1x8x8xbf16> to vector<8x8xbf16>
    %c0_19 = arith.constant 0 : index
    %c0_20 = arith.constant 0 : index
    %c40 = arith.constant 40 : index
    %33 = vector.load %arg2[%c0_19, %c0_20, %c40] : memref<1x8x96xbf16, #tpu.memory_space<vmem>>, vector<1x8x8xbf16>
    %34 = vector.shape_cast %33 : vector<1x8x8xbf16> to vector<8x8xbf16>
    %cst_21 = arith.constant dense<0.000000e+00> : vector<8x8xf32>
    %35 = tpu.matmul %30, %32, %cst_21 {dimension_numbers = #tpu.dot_dimension_numbers<[1], [1], [0], [0], [0, 0, 1, 0], [], []>} : vector<8x8xbf16>, vector<8x8xbf16>, vector<8x8xf32> -> vector<8x8xf32>
    %cst_22 = arith.constant 0.353553385 : f32
    %36 = vector.broadcast %cst_22 : f32 to vector<8x8xf32>
    %37 = arith.mulf %35, %36 : vector<8x8xf32>
    %38 = vector.broadcast %5 : vector<1x8xf32> to vector<8x8xf32>
    %39 = arith.addf %37, %38 : vector<8x8xf32>
    %cst_23 = arith.constant dense<0xFF800000> : vector<8xf32>
    %40 = vector.multi_reduction <maximumf>, %39, %cst_23 [1] : vector<8x8xf32> to vector<8xf32>
    %41 = vector.shape_cast %40 : vector<8xf32> to vector<8x1xf32>
    %42 = vector.broadcast %41 : vector<8x1xf32> to vector<8x8xf32>
    %43 = arith.subf %39, %42 : vector<8x8xf32>
    %44 = math.exp %43 : vector<8x8xf32>
    %cst_24 = arith.constant dense<0.000000e+00> : vector<8xf32>
    %45 = vector.multi_reduction <add>, %44, %cst_24 [1] : vector<8x8xf32> to vector<8xf32>
    %46 = vector.shape_cast %45 : vector<8xf32> to vector<8x1xf32>
    %47 = tpu.reciprocal %46 {approx = true} : vector<8x1xf32> -> vector<8x1xf32>
    %48 = vector.broadcast %47 : vector<8x1xf32> to vector<8x8xf32>
    %49 = arith.mulf %44, %48 : vector<8x8xf32>
    %50 = arith.truncf %49 : vector<8x8xf32> to vector<8x8xbf16>
    %cst_25 = arith.constant dense<0.000000e+00> : vector<8x8xf32>
    %51 = tpu.matmul %50, %34, %cst_25 {dimension_numbers = #tpu.dot_dimension_numbers<[1], [0], [0], [1], [0, 0, 1, 1], [], []>} : vector<8x8xbf16>, vector<8x8xbf16>, vector<8x8xf32> -> vector<8x8xf32>
    %c0_26 = arith.constant 0 : index
    %c0_27 = arith.constant 0 : index
    %c48 = arith.constant 48 : index
    %52 = vector.load %arg2[%c0_26, %c0_27, %c48] : memref<1x8x96xbf16, #tpu.memory_space<vmem>>, vector<1x8x8xbf16>
    %53 = vector.shape_cast %52 : vector<1x8x8xbf16> to vector<8x8xbf16>
    %c0_28 = arith.constant 0 : index
    %c0_29 = arith.constant 0 : index
    %c56 = arith.constant 56 : index
    %54 = vector.load %arg2[%c0_28, %c0_29, %c56] : memref<1x8x96xbf16, #tpu.memory_space<vmem>>, vector<1x8x8xbf16>
    %55 = vector.shape_cast %54 : vector<1x8x8xbf16> to vector<8x8xbf16>
    %c0_30 = arith.constant 0 : index
    %c0_31 = arith.constant 0 : index
    %c64 = arith.constant 64 : index
    %56 = vector.load %arg2[%c0_30, %c0_31, %c64] : memref<1x8x96xbf16, #tpu.memory_space<vmem>>, vector<1x8x8xbf16>
    %57 = vector.shape_cast %56 : vector<1x8x8xbf16> to vector<8x8xbf16>
    %cst_32 = arith.constant dense<0.000000e+00> : vector<8x8xf32>
    %58 = tpu.matmul %53, %55, %cst_32 {dimension_numbers = #tpu.dot_dimension_numbers<[1], [1], [0], [0], [0, 0, 1, 0], [], []>} : vector<8x8xbf16>, vector<8x8xbf16>, vector<8x8xf32> -> vector<8x8xf32>
    %cst_33 = arith.constant 0.353553385 : f32
    %59 = vector.broadcast %cst_33 : f32 to vector<8x8xf32>
    %60 = arith.mulf %58, %59 : vector<8x8xf32>
    %61 = vector.broadcast %5 : vector<1x8xf32> to vector<8x8xf32>
    %62 = arith.addf %60, %61 : vector<8x8xf32>
    %cst_34 = arith.constant dense<0xFF800000> : vector<8xf32>
    %63 = vector.multi_reduction <maximumf>, %62, %cst_34 [1] : vector<8x8xf32> to vector<8xf32>
    %64 = vector.shape_cast %63 : vector<8xf32> to vector<8x1xf32>
    %65 = vector.broadcast %64 : vector<8x1xf32> to vector<8x8xf32>
    %66 = arith.subf %62, %65 : vector<8x8xf32>
    %67 = math.exp %66 : vector<8x8xf32>
    %cst_35 = arith.constant dense<0.000000e+00> : vector<8xf32>
    %68 = vector.multi_reduction <add>, %67, %cst_35 [1] : vector<8x8xf32> to vector<8xf32>
    %69 = vector.shape_cast %68 : vector<8xf32> to vector<8x1xf32>
    %70 = tpu.reciprocal %69 {approx = true} : vector<8x1xf32> -> vector<8x1xf32>
    %71 = vector.broadcast %70 : vector<8x1xf32> to vector<8x8xf32>
    %72 = arith.mulf %67, %71 : vector<8x8xf32>
    %73 = arith.truncf %72 : vector<8x8xf32> to vector<8x8xbf16>
    %cst_36 = arith.constant dense<0.000000e+00> : vector<8x8xf32>
    %74 = tpu.matmul %73, %57, %cst_36 {dimension_numbers = #tpu.dot_dimension_numbers<[1], [0], [0], [1], [0, 0, 1, 1], [], []>} : vector<8x8xbf16>, vector<8x8xbf16>, vector<8x8xf32> -> vector<8x8xf32>
    %c0_37 = arith.constant 0 : index
    %c0_38 = arith.constant 0 : index
    %c72 = arith.constant 72 : index
    %75 = vector.load %arg2[%c0_37, %c0_38, %c72] : memref<1x8x96xbf16, #tpu.memory_space<vmem>>, vector<1x8x8xbf16>
    %76 = vector.shape_cast %75 : vector<1x8x8xbf16> to vector<8x8xbf16>
    %c0_39 = arith.constant 0 : index
    %c0_40 = arith.constant 0 : index
    %c80 = arith.constant 80 : index
    %77 = vector.load %arg2[%c0_39, %c0_40, %c80] : memref<1x8x96xbf16, #tpu.memory_space<vmem>>, vector<1x8x8xbf16>
    %78 = vector.shape_cast %77 : vector<1x8x8xbf16> to vector<8x8xbf16>
    %c0_41 = arith.constant 0 : index
    %c0_42 = arith.constant 0 : index
    %c88 = arith.constant 88 : index
    %79 = vector.load %arg2[%c0_41, %c0_42, %c88] : memref<1x8x96xbf16, #tpu.memory_space<vmem>>, vector<1x8x8xbf16>
    %80 = vector.shape_cast %79 : vector<1x8x8xbf16> to vector<8x8xbf16>
    %cst_43 = arith.constant dense<0.000000e+00> : vector<8x8xf32>
    %81 = tpu.matmul %76, %78, %cst_43 {dimension_numbers = #tpu.dot_dimension_numbers<[1], [1], [0], [0], [0, 0, 1, 0], [], []>} : vector<8x8xbf16>, vector<8x8xbf16>, vector<8x8xf32> -> vector<8x8xf32>
    %cst_44 = arith.constant 0.353553385 : f32
    %82 = vector.broadcast %cst_44 : f32 to vector<8x8xf32>
    %83 = arith.mulf %81, %82 : vector<8x8xf32>
    %84 = vector.broadcast %5 : vector<1x8xf32> to vector<8x8xf32>
    %85 = arith.addf %83, %84 : vector<8x8xf32>
    %cst_45 = arith.constant dense<0xFF800000> : vector<8xf32>
    %86 = vector.multi_reduction <maximumf>, %85, %cst_45 [1] : vector<8x8xf32> to vector<8xf32>
    %87 = vector.shape_cast %86 : vector<8xf32> to vector<8x1xf32>
    %88 = vector.broadcast %87 : vector<8x1xf32> to vector<8x8xf32>
    %89 = arith.subf %85, %88 : vector<8x8xf32>
    %90 = math.exp %89 : vector<8x8xf32>
    %cst_46 = arith.constant dense<0.000000e+00> : vector<8xf32>
    %91 = vector.multi_reduction <add>, %90, %cst_46 [1] : vector<8x8xf32> to vector<8xf32>
    %92 = vector.shape_cast %91 : vector<8xf32> to vector<8x1xf32>
    %93 = tpu.reciprocal %92 {approx = true} : vector<8x1xf32> -> vector<8x1xf32>
    %94 = vector.broadcast %93 : vector<8x1xf32> to vector<8x8xf32>
    %95 = arith.mulf %90, %94 : vector<8x8xf32>
    %96 = arith.truncf %95 : vector<8x8xf32> to vector<8x8xbf16>
    %cst_47 = arith.constant dense<0.000000e+00> : vector<8x8xf32>
    %97 = tpu.matmul %96, %80, %cst_47 {dimension_numbers = #tpu.dot_dimension_numbers<[1], [0], [0], [1], [0, 0, 1, 1], [], []>} : vector<8x8xbf16>, vector<8x8xbf16>, vector<8x8xf32> -> vector<8x8xf32>
    %98 = tpu.concatenate %28, %51, %74, %97 in 1 : vector<8x8xf32>, vector<8x8xf32>, vector<8x8xf32>, vector<8x8xf32> -> vector<8x32xf32>
    %99 = arith.truncf %98 : vector<8x32xf32> to vector<8x32xbf16>
    %c0_48 = arith.constant 0 : index
    %c0_49 = arith.constant 0 : index
    %c0_50 = arith.constant 0 : index
    %100 = vector.load %arg4[%c0_48, %c0_49, %c0_50] : memref<1x8x32xbf16, #tpu.memory_space<vmem>>, vector<1x8x32xbf16>
    %101 = vector.shape_cast %100 : vector<1x8x32xbf16> to vector<8x32xbf16>
    %102 = vector.shape_cast %99 : vector<8x32xbf16> to vector<1x8x32xbf16>
    tpu.vector_store %arg4[%c0_48, %c0_49, %c0_50], %102 {strides = array<i32>} : memref<1x8x32xbf16, #tpu.memory_space<vmem>>, vector<1x8x32xbf16>,
    return
  }
  func.func @transform_0(%arg0: i32, %arg1: i32) -> (i32, i32, i32) {
    %c0_i32 = arith.constant 0 : i32
    %c0_i32_0 = arith.constant 0 : i32
    return %arg0, %c0_i32, %arg1 : i32, i32, i32
  }
  func.func @transform_1(%arg0: i32, %arg1: i32) -> (i32, i32, i32) {
    %c0_i32 = arith.constant 0 : i32
    %c0_i32_0 = arith.constant 0 : i32
    %c0_i32_1 = arith.constant 0 : i32
    return %arg0, %c0_i32, %c0_i32_0 : i32, i32, i32
  }
  func.func @transform_2(%arg0: i32, %arg1: i32) -> (i32, i32, i32) {
    %c0_i32 = arith.constant 0 : i32
    %c0_i32_0 = arith.constant 0 : i32
    return %arg0, %c0_i32, %arg1 : i32, i32, i32
  }
}

module attributes {stable_mosaic.version = 11 : i64} {
  func.func @_linear_kernel(%arg0: i32, %arg1: i32, %arg2: i32, %arg3: memref<16x32xf32, #tpu.memory_space<vmem>>, %arg4: memref<32x96xbf16, #tpu.memory_space<vmem>>, %arg5: memref<1x96xf32, #tpu.memory_space<vmem>>, %arg6: memref<16x96xbf16, #tpu.memory_space<vmem>>, %arg7: memref<16x96xf32, #tpu.memory_space<vmem>>) attributes {dimension_semantics = [#tpu.dimension_semantics<parallel>, #tpu.dimension_semantics<parallel>, #tpu.dimension_semantics<arbitrary>], iteration_bounds = array<i64: 1, 1, 1>, scalar_prefetch = 0 : i64, scratch_operands = 1 : i64, tpu.core_type = #tpu.core_type<tc>, window_params = [{transform_indices = @transform_0, window_bounds = array<i64: 16, 32>}, {transform_indices = @transform_1, window_bounds = array<i64: 32, 96>}, {transform_indices = @transform_2, window_bounds = array<i64: 1, 96>}, {transform_indices = @transform_3, window_bounds = array<i64: 16, 96>}]} {
    %c0_i32 = arith.constant 0 : i32
    %0 = arith.cmpi eq, %arg2, %c0_i32 : i32
    %1 = arith.extui %0 : i1 to i32
    %c0_i32_0 = arith.constant 0 : i32
    %2 = arith.cmpi ne, %1, %c0_i32_0 : i32
    scf.if %2 {
      %cst_10 = arith.constant 0.000000e+00 : f32
      %13 = vector.broadcast %cst_10 : f32 to vector<16x96xf32>
      %c0_11 = arith.constant 0 : index
      %c0_12 = arith.constant 0 : index
      %14 = vector.load %arg7[%c0_11, %c0_12] : memref<16x96xf32, #tpu.memory_space<vmem>>, vector<16x96xf32>
      tpu.vector_store %arg7[%c0_11, %c0_12], %13 {strides = array<i32>} : memref<16x96xf32, #tpu.memory_space<vmem>>, vector<16x96xf32>,
    } else {
    }
    %c0 = arith.constant 0 : index
    %c0_1 = arith.constant 0 : index
    %3 = vector.load %arg7[%c0, %c0_1] : memref<16x96xf32, #tpu.memory_space<vmem>>, vector<16x96xf32>
    %c0_2 = arith.constant 0 : index
    %c0_3 = arith.constant 0 : index
    %4 = vector.load %arg3[%c0_2, %c0_3] : memref<16x32xf32, #tpu.memory_space<vmem>>, vector<16x32xf32>
    %5 = arith.truncf %4 : vector<16x32xf32> to vector<16x32xbf16>
    %c0_4 = arith.constant 0 : index
    %c0_5 = arith.constant 0 : index
    %6 = vector.load %arg4[%c0_4, %c0_5] : memref<32x96xbf16, #tpu.memory_space<vmem>>, vector<32x96xbf16>
    %cst = arith.constant dense<0.000000e+00> : vector<16x96xf32>
    %7 = tpu.matmul %5, %6, %cst {dimension_numbers = #tpu.dot_dimension_numbers<[1], [0], [0], [1], [0, 0, 1, 1], [], []>} : vector<16x32xbf16>, vector<32x96xbf16>, vector<16x96xf32> -> vector<16x96xf32>
    %8 = arith.addf %3, %7 : vector<16x96xf32>
    %c0_6 = arith.constant 0 : index
    %c0_7 = arith.constant 0 : index
    %9 = vector.load %arg7[%c0_6, %c0_7] : memref<16x96xf32, #tpu.memory_space<vmem>>, vector<16x96xf32>
    tpu.vector_store %arg7[%c0_6, %c0_7], %8 {strides = array<i32>} : memref<16x96xf32, #tpu.memory_space<vmem>>, vector<16x96xf32>,
    %c0_i32_8 = arith.constant 0 : i32
    %10 = arith.cmpi eq, %arg2, %c0_i32_8 : i32
    %11 = arith.extui %10 : i1 to i32
    %c0_i32_9 = arith.constant 0 : i32
    %12 = arith.cmpi ne, %11, %c0_i32_9 : i32
    scf.if %12 {
      %c0_10 = arith.constant 0 : index
      %c0_11 = arith.constant 0 : index
      %13 = vector.load %arg7[%c0_10, %c0_11] : memref<16x96xf32, #tpu.memory_space<vmem>>, vector<16x96xf32>
      %c0_12 = arith.constant 0 : index
      %c0_13 = arith.constant 0 : index
      %14 = vector.load %arg5[%c0_12, %c0_13] : memref<1x96xf32, #tpu.memory_space<vmem>>, vector<1x96xf32>
      %15 = vector.broadcast %14 : vector<1x96xf32> to vector<16x96xf32>
      %16 = arith.addf %13, %15 : vector<16x96xf32>
      %17 = arith.truncf %16 : vector<16x96xf32> to vector<16x96xbf16>
      %c0_14 = arith.constant 0 : index
      %c0_15 = arith.constant 0 : index
      %18 = vector.load %arg6[%c0_14, %c0_15] : memref<16x96xbf16, #tpu.memory_space<vmem>>, vector<16x96xbf16>
      tpu.vector_store %arg6[%c0_14, %c0_15], %17 {strides = array<i32>} : memref<16x96xbf16, #tpu.memory_space<vmem>>, vector<16x96xbf16>,
    } else {
    }
    return
  }
  func.func @transform_0(%arg0: i32, %arg1: i32, %arg2: i32) -> (i32, i32) {
    %c0_i32 = arith.constant 0 : i32
    return %arg0, %arg2 : i32, i32
  }
  func.func @transform_1(%arg0: i32, %arg1: i32, %arg2: i32) -> (i32, i32) {
    %c0_i32 = arith.constant 0 : i32
    return %arg2, %arg1 : i32, i32
  }
  func.func @transform_2(%arg0: i32, %arg1: i32, %arg2: i32) -> (i32, i32) {
    %c0_i32 = arith.constant 0 : i32
    %c0_i32_0 = arith.constant 0 : i32
    return %c0_i32, %arg1 : i32, i32
  }
  func.func @transform_3(%arg0: i32, %arg1: i32, %arg2: i32) -> (i32, i32) {
    %c0_i32 = arith.constant 0 : i32
    return %arg0, %arg1 : i32, i32
  }
}

module attributes {stable_mosaic.version = 11 : i64} {
  func.func @_ln_kernel(%arg0: i32, %arg1: memref<16x32xf32, #tpu.memory_space<vmem>>, %arg2: memref<1x32xf32, #tpu.memory_space<vmem>>, %arg3: memref<1x32xf32, #tpu.memory_space<vmem>>, %arg4: memref<16x32xf32, #tpu.memory_space<vmem>>) attributes {dimension_semantics = [#tpu.dimension_semantics<parallel>], iteration_bounds = array<i64: 1>, scalar_prefetch = 0 : i64, scratch_operands = 0 : i64, tpu.core_type = #tpu.core_type<tc>, window_params = [{transform_indices = @transform_0, window_bounds = array<i64: 16, 32>}, {pipeline_mode = #tpu.pipeline_mode<synchronous>, transform_indices = @transform_1, window_bounds = array<i64: 1, 32>}, {pipeline_mode = #tpu.pipeline_mode<synchronous>, transform_indices = @transform_2, window_bounds = array<i64: 1, 32>}, {transform_indices = @transform_3, window_bounds = array<i64: 16, 32>}]} {
    %c0 = arith.constant 0 : index
    %c0_0 = arith.constant 0 : index
    %0 = vector.load %arg1[%c0, %c0_0] : memref<16x32xf32, #tpu.memory_space<vmem>>, vector<16x32xf32>
    %c0_1 = arith.constant 0 : index
    %c0_2 = arith.constant 0 : index
    %1 = vector.load %arg2[%c0_1, %c0_2] : memref<1x32xf32, #tpu.memory_space<vmem>>, vector<1x32xf32>
    %c0_3 = arith.constant 0 : index
    %c0_4 = arith.constant 0 : index
    %2 = vector.load %arg3[%c0_3, %c0_4] : memref<1x32xf32, #tpu.memory_space<vmem>>, vector<1x32xf32>
    %cst = arith.constant dense<0.000000e+00> : vector<16xf32>
    %3 = vector.multi_reduction <add>, %0, %cst [1] : vector<16x32xf32> to vector<16xf32>
    %4 = vector.shape_cast %3 : vector<16xf32> to vector<16x1xf32>
    %cst_5 = arith.constant 3.200000e+01 : f32
    %5 = vector.broadcast %cst_5 : f32 to vector<16x1xf32>
    %6 = arith.divf %4, %5 : vector<16x1xf32>
    %7 = vector.broadcast %6 : vector<16x1xf32> to vector<16x32xf32>
    %8 = arith.subf %0, %7 : vector<16x32xf32>
    %9 = arith.mulf %8, %8 : vector<16x32xf32>
    %cst_6 = arith.constant dense<0.000000e+00> : vector<16xf32>
    %10 = vector.multi_reduction <add>, %9, %cst_6 [1] : vector<16x32xf32> to vector<16xf32>
    %11 = vector.shape_cast %10 : vector<16xf32> to vector<16x1xf32>
    %cst_7 = arith.constant 3.200000e+01 : f32
    %12 = vector.broadcast %cst_7 : f32 to vector<16x1xf32>
    %13 = arith.divf %11, %12 : vector<16x1xf32>
    %14 = vector.broadcast %6 : vector<16x1xf32> to vector<16x32xf32>
    %15 = arith.subf %0, %14 : vector<16x32xf32>
    %cst_8 = arith.constant 9.99999996E-13 : f32
    %16 = vector.broadcast %cst_8 : f32 to vector<16x1xf32>
    %17 = arith.addf %13, %16 : vector<16x1xf32>
    %18 = math.rsqrt %17 : vector<16x1xf32>
    %19 = vector.broadcast %18 : vector<16x1xf32> to vector<16x32xf32>
    %20 = arith.mulf %15, %19 : vector<16x32xf32>
    %21 = vector.broadcast %1 : vector<1x32xf32> to vector<16x32xf32>
    %22 = arith.mulf %20, %21 : vector<16x32xf32>
    %23 = vector.broadcast %2 : vector<1x32xf32> to vector<16x32xf32>
    %24 = arith.addf %22, %23 : vector<16x32xf32>
    %c0_9 = arith.constant 0 : index
    %c0_10 = arith.constant 0 : index
    %25 = vector.load %arg4[%c0_9, %c0_10] : memref<16x32xf32, #tpu.memory_space<vmem>>, vector<16x32xf32>
    tpu.vector_store %arg4[%c0_9, %c0_10], %24 {strides = array<i32>} : memref<16x32xf32, #tpu.memory_space<vmem>>, vector<16x32xf32>,
    return
  }
  func.func @transform_0(%arg0: i32) -> (i32, i32) {
    %c0_i32 = arith.constant 0 : i32
    %c0_i32_0 = arith.constant 0 : i32
    return %arg0, %c0_i32 : i32, i32
  }
  func.func @transform_1(%arg0: i32) -> (i32, i32) {
    %c0_i32 = arith.constant 0 : i32
    %c0_i32_0 = arith.constant 0 : i32
    %c0_i32_1 = arith.constant 0 : i32
    return %c0_i32, %c0_i32_0 : i32, i32
  }
  func.func @transform_2(%arg0: i32) -> (i32, i32) {
    %c0_i32 = arith.constant 0 : i32
    %c0_i32_0 = arith.constant 0 : i32
    %c0_i32_1 = arith.constant 0 : i32
    return %c0_i32, %c0_i32_0 : i32, i32
  }
  func.func @transform_3(%arg0: i32) -> (i32, i32) {
    %c0_i32 = arith.constant 0 : i32
    %c0_i32_0 = arith.constant 0 : i32
    return %arg0, %c0_i32 : i32, i32
  }
}

module attributes {stable_mosaic.version = 11 : i64} {
  func.func @_linear_add_ln_kernel(%arg0: i32, %arg1: i32, %arg2: memref<16x32xbf16, #tpu.memory_space<vmem>>, %arg3: memref<32x32xbf16, #tpu.memory_space<vmem>>, %arg4: memref<1x32xf32, #tpu.memory_space<vmem>>, %arg5: memref<16x32xf32, #tpu.memory_space<vmem>>, %arg6: memref<1x32xf32, #tpu.memory_space<vmem>>, %arg7: memref<1x32xf32, #tpu.memory_space<vmem>>, %arg8: memref<16x32xf32, #tpu.memory_space<vmem>>, %arg9: memref<16x32xf32, #tpu.memory_space<vmem>>) attributes {dimension_semantics = [#tpu.dimension_semantics<parallel>, #tpu.dimension_semantics<arbitrary>], iteration_bounds = array<i64: 1, 1>, scalar_prefetch = 0 : i64, scratch_operands = 1 : i64, tpu.core_type = #tpu.core_type<tc>, window_params = [{transform_indices = @transform_0, window_bounds = array<i64: 16, 32>}, {transform_indices = @transform_1, window_bounds = array<i64: 32, 32>}, {pipeline_mode = #tpu.pipeline_mode<synchronous>, transform_indices = @transform_2, window_bounds = array<i64: 1, 32>}, {transform_indices = @transform_3, window_bounds = array<i64: 16, 32>}, {pipeline_mode = #tpu.pipeline_mode<synchronous>, transform_indices = @transform_4, window_bounds = array<i64: 1, 32>}, {pipeline_mode = #tpu.pipeline_mode<synchronous>, transform_indices = @transform_5, window_bounds = array<i64: 1, 32>}, {transform_indices = @transform_6, window_bounds = array<i64: 16, 32>}]} {
    %c0_i32 = arith.constant 0 : i32
    %0 = arith.cmpi eq, %arg1, %c0_i32 : i32
    %1 = arith.extui %0 : i1 to i32
    %c0_i32_0 = arith.constant 0 : i32
    %2 = arith.cmpi ne, %1, %c0_i32_0 : i32
    scf.if %2 {
      %cst_10 = arith.constant 0.000000e+00 : f32
      %12 = vector.broadcast %cst_10 : f32 to vector<16x32xf32>
      %c0_11 = arith.constant 0 : index
      %c0_12 = arith.constant 0 : index
      %13 = vector.load %arg9[%c0_11, %c0_12] : memref<16x32xf32, #tpu.memory_space<vmem>>, vector<16x32xf32>
      tpu.vector_store %arg9[%c0_11, %c0_12], %12 {strides = array<i32>} : memref<16x32xf32, #tpu.memory_space<vmem>>, vector<16x32xf32>,
    } else {
    }
    %c0 = arith.constant 0 : index
    %c0_1 = arith.constant 0 : index
    %3 = vector.load %arg9[%c0, %c0_1] : memref<16x32xf32, #tpu.memory_space<vmem>>, vector<16x32xf32>
    %c0_2 = arith.constant 0 : index
    %c0_3 = arith.constant 0 : index
    %4 = vector.load %arg2[%c0_2, %c0_3] : memref<16x32xbf16, #tpu.memory_space<vmem>>, vector<16x32xbf16>
    %c0_4 = arith.constant 0 : index
    %c0_5 = arith.constant 0 : index
    %5 = vector.load %arg3[%c0_4, %c0_5] : memref<32x32xbf16, #tpu.memory_space<vmem>>, vector<32x32xbf16>
    %cst = arith.constant dense<0.000000e+00> : vector<16x32xf32>
    %6 = tpu.matmul %4, %5, %cst {dimension_numbers = #tpu.dot_dimension_numbers<[1], [0], [0], [1], [0, 0, 1, 1], [], []>} : vector<16x32xbf16>, vector<32x32xbf16>, vector<16x32xf32> -> vector<16x32xf32>
    %7 = arith.addf %3, %6 : vector<16x32xf32>
    %c0_6 = arith.constant 0 : index
    %c0_7 = arith.constant 0 : index
    %8 = vector.load %arg9[%c0_6, %c0_7] : memref<16x32xf32, #tpu.memory_space<vmem>>, vector<16x32xf32>
    tpu.vector_store %arg9[%c0_6, %c0_7], %7 {strides = array<i32>} : memref<16x32xf32, #tpu.memory_space<vmem>>, vector<16x32xf32>,
    %c0_i32_8 = arith.constant 0 : i32
    %9 = arith.cmpi eq, %arg1, %c0_i32_8 : i32
    %10 = arith.extui %9 : i1 to i32
    %c0_i32_9 = arith.constant 0 : i32
    %11 = arith.cmpi ne, %10, %c0_i32_9 : i32
    scf.if %11 {
      %c0_10 = arith.constant 0 : index
      %c0_11 = arith.constant 0 : index
      %12 = vector.load %arg9[%c0_10, %c0_11] : memref<16x32xf32, #tpu.memory_space<vmem>>, vector<16x32xf32>
      %c0_12 = arith.constant 0 : index
      %c0_13 = arith.constant 0 : index
      %13 = vector.load %arg4[%c0_12, %c0_13] : memref<1x32xf32, #tpu.memory_space<vmem>>, vector<1x32xf32>
      %14 = vector.broadcast %13 : vector<1x32xf32> to vector<16x32xf32>
      %15 = arith.addf %12, %14 : vector<16x32xf32>
      %c0_14 = arith.constant 0 : index
      %c0_15 = arith.constant 0 : index
      %16 = vector.load %arg5[%c0_14, %c0_15] : memref<16x32xf32, #tpu.memory_space<vmem>>, vector<16x32xf32>
      %17 = arith.addf %15, %16 : vector<16x32xf32>
      %c0_16 = arith.constant 0 : index
      %c0_17 = arith.constant 0 : index
      %18 = vector.load %arg6[%c0_16, %c0_17] : memref<1x32xf32, #tpu.memory_space<vmem>>, vector<1x32xf32>
      %c0_18 = arith.constant 0 : index
      %c0_19 = arith.constant 0 : index
      %19 = vector.load %arg7[%c0_18, %c0_19] : memref<1x32xf32, #tpu.memory_space<vmem>>, vector<1x32xf32>
      %cst_20 = arith.constant dense<0.000000e+00> : vector<16xf32>
      %20 = vector.multi_reduction <add>, %17, %cst_20 [1] : vector<16x32xf32> to vector<16xf32>
      %21 = vector.shape_cast %20 : vector<16xf32> to vector<16x1xf32>
      %cst_21 = arith.constant 3.200000e+01 : f32
      %22 = vector.broadcast %cst_21 : f32 to vector<16x1xf32>
      %23 = arith.divf %21, %22 : vector<16x1xf32>
      %24 = vector.broadcast %23 : vector<16x1xf32> to vector<16x32xf32>
      %25 = arith.subf %17, %24 : vector<16x32xf32>
      %26 = arith.mulf %25, %25 : vector<16x32xf32>
      %cst_22 = arith.constant dense<0.000000e+00> : vector<16xf32>
      %27 = vector.multi_reduction <add>, %26, %cst_22 [1] : vector<16x32xf32> to vector<16xf32>
      %28 = vector.shape_cast %27 : vector<16xf32> to vector<16x1xf32>
      %cst_23 = arith.constant 3.200000e+01 : f32
      %29 = vector.broadcast %cst_23 : f32 to vector<16x1xf32>
      %30 = arith.divf %28, %29 : vector<16x1xf32>
      %31 = vector.broadcast %23 : vector<16x1xf32> to vector<16x32xf32>
      %32 = arith.subf %17, %31 : vector<16x32xf32>
      %cst_24 = arith.constant 9.99999996E-13 : f32
      %33 = vector.broadcast %cst_24 : f32 to vector<16x1xf32>
      %34 = arith.addf %30, %33 : vector<16x1xf32>
      %35 = math.rsqrt %34 : vector<16x1xf32>
      %36 = vector.broadcast %35 : vector<16x1xf32> to vector<16x32xf32>
      %37 = arith.mulf %32, %36 : vector<16x32xf32>
      %38 = vector.broadcast %18 : vector<1x32xf32> to vector<16x32xf32>
      %39 = arith.mulf %37, %38 : vector<16x32xf32>
      %40 = vector.broadcast %19 : vector<1x32xf32> to vector<16x32xf32>
      %41 = arith.addf %39, %40 : vector<16x32xf32>
      %c0_25 = arith.constant 0 : index
      %c0_26 = arith.constant 0 : index
      %42 = vector.load %arg8[%c0_25, %c0_26] : memref<16x32xf32, #tpu.memory_space<vmem>>, vector<16x32xf32>
      tpu.vector_store %arg8[%c0_25, %c0_26], %41 {strides = array<i32>} : memref<16x32xf32, #tpu.memory_space<vmem>>, vector<16x32xf32>,
    } else {
    }
    return
  }
  func.func @transform_0(%arg0: i32, %arg1: i32) -> (i32, i32) {
    %c0_i32 = arith.constant 0 : i32
    return %arg0, %arg1 : i32, i32
  }
  func.func @transform_1(%arg0: i32, %arg1: i32) -> (i32, i32) {
    %c0_i32 = arith.constant 0 : i32
    %c0_i32_0 = arith.constant 0 : i32
    return %arg1, %c0_i32 : i32, i32
  }
  func.func @transform_2(%arg0: i32, %arg1: i32) -> (i32, i32) {
    %c0_i32 = arith.constant 0 : i32
    %c0_i32_0 = arith.constant 0 : i32
    %c0_i32_1 = arith.constant 0 : i32
    return %c0_i32, %c0_i32_0 : i32, i32
  }
  func.func @transform_3(%arg0: i32, %arg1: i32) -> (i32, i32) {
    %c0_i32 = arith.constant 0 : i32
    %c0_i32_0 = arith.constant 0 : i32
    return %arg0, %c0_i32 : i32, i32
  }
  func.func @transform_4(%arg0: i32, %arg1: i32) -> (i32, i32) {
    %c0_i32 = arith.constant 0 : i32
    %c0_i32_0 = arith.constant 0 : i32
    %c0_i32_1 = arith.constant 0 : i32
    return %c0_i32, %c0_i32_0 : i32, i32
  }
  func.func @transform_5(%arg0: i32, %arg1: i32) -> (i32, i32) {
    %c0_i32 = arith.constant 0 : i32
    %c0_i32_0 = arith.constant 0 : i32
    %c0_i32_1 = arith.constant 0 : i32
    return %c0_i32, %c0_i32_0 : i32, i32
  }
  func.func @transform_6(%arg0: i32, %arg1: i32) -> (i32, i32) {
    %c0_i32 = arith.constant 0 : i32
    %c0_i32_0 = arith.constant 0 : i32
    return %arg0, %c0_i32 : i32, i32
  }
}

module attributes {stable_mosaic.version = 11 : i64} {
  func.func @_linear_kernel(%arg0: i32, %arg1: i32, %arg2: i32, %arg3: memref<16x32xf32, #tpu.memory_space<vmem>>, %arg4: memref<32x64xbf16, #tpu.memory_space<vmem>>, %arg5: memref<1x64xf32, #tpu.memory_space<vmem>>, %arg6: memref<16x64xbf16, #tpu.memory_space<vmem>>, %arg7: memref<16x64xf32, #tpu.memory_space<vmem>>) attributes {dimension_semantics = [#tpu.dimension_semantics<parallel>, #tpu.dimension_semantics<parallel>, #tpu.dimension_semantics<arbitrary>], iteration_bounds = array<i64: 1, 1, 1>, scalar_prefetch = 0 : i64, scratch_operands = 1 : i64, tpu.core_type = #tpu.core_type<tc>, window_params = [{transform_indices = @transform_0, window_bounds = array<i64: 16, 32>}, {transform_indices = @transform_1, window_bounds = array<i64: 32, 64>}, {transform_indices = @transform_2, window_bounds = array<i64: 1, 64>}, {transform_indices = @transform_3, window_bounds = array<i64: 16, 64>}]} {
    %c0_i32 = arith.constant 0 : i32
    %0 = arith.cmpi eq, %arg2, %c0_i32 : i32
    %1 = arith.extui %0 : i1 to i32
    %c0_i32_0 = arith.constant 0 : i32
    %2 = arith.cmpi ne, %1, %c0_i32_0 : i32
    scf.if %2 {
      %cst_10 = arith.constant 0.000000e+00 : f32
      %13 = vector.broadcast %cst_10 : f32 to vector<16x64xf32>
      %c0_11 = arith.constant 0 : index
      %c0_12 = arith.constant 0 : index
      %14 = vector.load %arg7[%c0_11, %c0_12] : memref<16x64xf32, #tpu.memory_space<vmem>>, vector<16x64xf32>
      tpu.vector_store %arg7[%c0_11, %c0_12], %13 {strides = array<i32>} : memref<16x64xf32, #tpu.memory_space<vmem>>, vector<16x64xf32>,
    } else {
    }
    %c0 = arith.constant 0 : index
    %c0_1 = arith.constant 0 : index
    %3 = vector.load %arg7[%c0, %c0_1] : memref<16x64xf32, #tpu.memory_space<vmem>>, vector<16x64xf32>
    %c0_2 = arith.constant 0 : index
    %c0_3 = arith.constant 0 : index
    %4 = vector.load %arg3[%c0_2, %c0_3] : memref<16x32xf32, #tpu.memory_space<vmem>>, vector<16x32xf32>
    %5 = arith.truncf %4 : vector<16x32xf32> to vector<16x32xbf16>
    %c0_4 = arith.constant 0 : index
    %c0_5 = arith.constant 0 : index
    %6 = vector.load %arg4[%c0_4, %c0_5] : memref<32x64xbf16, #tpu.memory_space<vmem>>, vector<32x64xbf16>
    %cst = arith.constant dense<0.000000e+00> : vector<16x64xf32>
    %7 = tpu.matmul %5, %6, %cst {dimension_numbers = #tpu.dot_dimension_numbers<[1], [0], [0], [1], [0, 0, 1, 1], [], []>} : vector<16x32xbf16>, vector<32x64xbf16>, vector<16x64xf32> -> vector<16x64xf32>
    %8 = arith.addf %3, %7 : vector<16x64xf32>
    %c0_6 = arith.constant 0 : index
    %c0_7 = arith.constant 0 : index
    %9 = vector.load %arg7[%c0_6, %c0_7] : memref<16x64xf32, #tpu.memory_space<vmem>>, vector<16x64xf32>
    tpu.vector_store %arg7[%c0_6, %c0_7], %8 {strides = array<i32>} : memref<16x64xf32, #tpu.memory_space<vmem>>, vector<16x64xf32>,
    %c0_i32_8 = arith.constant 0 : i32
    %10 = arith.cmpi eq, %arg2, %c0_i32_8 : i32
    %11 = arith.extui %10 : i1 to i32
    %c0_i32_9 = arith.constant 0 : i32
    %12 = arith.cmpi ne, %11, %c0_i32_9 : i32
    scf.if %12 {
      %c0_10 = arith.constant 0 : index
      %c0_11 = arith.constant 0 : index
      %13 = vector.load %arg7[%c0_10, %c0_11] : memref<16x64xf32, #tpu.memory_space<vmem>>, vector<16x64xf32>
      %c0_12 = arith.constant 0 : index
      %c0_13 = arith.constant 0 : index
      %14 = vector.load %arg5[%c0_12, %c0_13] : memref<1x64xf32, #tpu.memory_space<vmem>>, vector<1x64xf32>
      %15 = vector.broadcast %14 : vector<1x64xf32> to vector<16x64xf32>
      %16 = arith.addf %13, %15 : vector<16x64xf32>
      %cst_14 = arith.constant 5.000000e-01 : f32
      %17 = vector.broadcast %cst_14 : f32 to vector<16x64xf32>
      %18 = arith.mulf %17, %16 : vector<16x64xf32>
      %cst_15 = arith.constant 4.471500e-02 : f32
      %19 = vector.broadcast %cst_15 : f32 to vector<16x64xf32>
      %20 = arith.mulf %19, %16 : vector<16x64xf32>
      %21 = arith.mulf %20, %16 : vector<16x64xf32>
      %22 = arith.mulf %21, %16 : vector<16x64xf32>
      %23 = arith.addf %16, %22 : vector<16x64xf32>
      %cst_16 = arith.constant 0.797884583 : f32
      %24 = vector.broadcast %cst_16 : f32 to vector<16x64xf32>
      %25 = arith.mulf %24, %23 : vector<16x64xf32>
      %26 = math.tanh %25 : vector<16x64xf32>
      %cst_17 = arith.constant 1.000000e+00 : f32
      %27 = vector.broadcast %cst_17 : f32 to vector<16x64xf32>
      %28 = arith.addf %27, %26 : vector<16x64xf32>
      %29 = arith.mulf %18, %28 : vector<16x64xf32>
      %30 = arith.truncf %29 : vector<16x64xf32> to vector<16x64xbf16>
      %c0_18 = arith.constant 0 : index
      %c0_19 = arith.constant 0 : index
      %31 = vector.load %arg6[%c0_18, %c0_19] : memref<16x64xbf16, #tpu.memory_space<vmem>>, vector<16x64xbf16>
      tpu.vector_store %arg6[%c0_18, %c0_19], %30 {strides = array<i32>} : memref<16x64xbf16, #tpu.memory_space<vmem>>, vector<16x64xbf16>,
    } else {
    }
    return
  }
  func.func @transform_0(%arg0: i32, %arg1: i32, %arg2: i32) -> (i32, i32) {
    %c0_i32 = arith.constant 0 : i32
    return %arg0, %arg2 : i32, i32
  }
  func.func @transform_1(%arg0: i32, %arg1: i32, %arg2: i32) -> (i32, i32) {
    %c0_i32 = arith.constant 0 : i32
    return %arg2, %arg1 : i32, i32
  }
  func.func @transform_2(%arg0: i32, %arg1: i32, %arg2: i32) -> (i32, i32) {
    %c0_i32 = arith.constant 0 : i32
    %c0_i32_0 = arith.constant 0 : i32
    return %c0_i32, %arg1 : i32, i32
  }
  func.func @transform_3(%arg0: i32, %arg1: i32, %arg2: i32) -> (i32, i32) {
    %c0_i32 = arith.constant 0 : i32
    return %arg0, %arg1 : i32, i32
  }
}

module attributes {stable_mosaic.version = 11 : i64} {
  func.func @_linear_add_ln_kernel(%arg0: i32, %arg1: i32, %arg2: memref<16x64xbf16, #tpu.memory_space<vmem>>, %arg3: memref<64x32xbf16, #tpu.memory_space<vmem>>, %arg4: memref<1x32xf32, #tpu.memory_space<vmem>>, %arg5: memref<16x32xf32, #tpu.memory_space<vmem>>, %arg6: memref<1x32xf32, #tpu.memory_space<vmem>>, %arg7: memref<1x32xf32, #tpu.memory_space<vmem>>, %arg8: memref<16x32xf32, #tpu.memory_space<vmem>>, %arg9: memref<16x32xf32, #tpu.memory_space<vmem>>) attributes {dimension_semantics = [#tpu.dimension_semantics<parallel>, #tpu.dimension_semantics<arbitrary>], iteration_bounds = array<i64: 1, 1>, scalar_prefetch = 0 : i64, scratch_operands = 1 : i64, tpu.core_type = #tpu.core_type<tc>, window_params = [{transform_indices = @transform_0, window_bounds = array<i64: 16, 64>}, {transform_indices = @transform_1, window_bounds = array<i64: 64, 32>}, {pipeline_mode = #tpu.pipeline_mode<synchronous>, transform_indices = @transform_2, window_bounds = array<i64: 1, 32>}, {transform_indices = @transform_3, window_bounds = array<i64: 16, 32>}, {pipeline_mode = #tpu.pipeline_mode<synchronous>, transform_indices = @transform_4, window_bounds = array<i64: 1, 32>}, {pipeline_mode = #tpu.pipeline_mode<synchronous>, transform_indices = @transform_5, window_bounds = array<i64: 1, 32>}, {transform_indices = @transform_6, window_bounds = array<i64: 16, 32>}]} {
    %c0_i32 = arith.constant 0 : i32
    %0 = arith.cmpi eq, %arg1, %c0_i32 : i32
    %1 = arith.extui %0 : i1 to i32
    %c0_i32_0 = arith.constant 0 : i32
    %2 = arith.cmpi ne, %1, %c0_i32_0 : i32
    scf.if %2 {
      %cst_10 = arith.constant 0.000000e+00 : f32
      %12 = vector.broadcast %cst_10 : f32 to vector<16x32xf32>
      %c0_11 = arith.constant 0 : index
      %c0_12 = arith.constant 0 : index
      %13 = vector.load %arg9[%c0_11, %c0_12] : memref<16x32xf32, #tpu.memory_space<vmem>>, vector<16x32xf32>
      tpu.vector_store %arg9[%c0_11, %c0_12], %12 {strides = array<i32>} : memref<16x32xf32, #tpu.memory_space<vmem>>, vector<16x32xf32>,
    } else {
    }
    %c0 = arith.constant 0 : index
    %c0_1 = arith.constant 0 : index
    %3 = vector.load %arg9[%c0, %c0_1] : memref<16x32xf32, #tpu.memory_space<vmem>>, vector<16x32xf32>
    %c0_2 = arith.constant 0 : index
    %c0_3 = arith.constant 0 : index
    %4 = vector.load %arg2[%c0_2, %c0_3] : memref<16x64xbf16, #tpu.memory_space<vmem>>, vector<16x64xbf16>
    %c0_4 = arith.constant 0 : index
    %c0_5 = arith.constant 0 : index
    %5 = vector.load %arg3[%c0_4, %c0_5] : memref<64x32xbf16, #tpu.memory_space<vmem>>, vector<64x32xbf16>
    %cst = arith.constant dense<0.000000e+00> : vector<16x32xf32>
    %6 = tpu.matmul %4, %5, %cst {dimension_numbers = #tpu.dot_dimension_numbers<[1], [0], [0], [1], [0, 0, 1, 1], [], []>} : vector<16x64xbf16>, vector<64x32xbf16>, vector<16x32xf32> -> vector<16x32xf32>
    %7 = arith.addf %3, %6 : vector<16x32xf32>
    %c0_6 = arith.constant 0 : index
    %c0_7 = arith.constant 0 : index
    %8 = vector.load %arg9[%c0_6, %c0_7] : memref<16x32xf32, #tpu.memory_space<vmem>>, vector<16x32xf32>
    tpu.vector_store %arg9[%c0_6, %c0_7], %7 {strides = array<i32>} : memref<16x32xf32, #tpu.memory_space<vmem>>, vector<16x32xf32>,
    %c0_i32_8 = arith.constant 0 : i32
    %9 = arith.cmpi eq, %arg1, %c0_i32_8 : i32
    %10 = arith.extui %9 : i1 to i32
    %c0_i32_9 = arith.constant 0 : i32
    %11 = arith.cmpi ne, %10, %c0_i32_9 : i32
    scf.if %11 {
      %c0_10 = arith.constant 0 : index
      %c0_11 = arith.constant 0 : index
      %12 = vector.load %arg9[%c0_10, %c0_11] : memref<16x32xf32, #tpu.memory_space<vmem>>, vector<16x32xf32>
      %c0_12 = arith.constant 0 : index
      %c0_13 = arith.constant 0 : index
      %13 = vector.load %arg4[%c0_12, %c0_13] : memref<1x32xf32, #tpu.memory_space<vmem>>, vector<1x32xf32>
      %14 = vector.broadcast %13 : vector<1x32xf32> to vector<16x32xf32>
      %15 = arith.addf %12, %14 : vector<16x32xf32>
      %c0_14 = arith.constant 0 : index
      %c0_15 = arith.constant 0 : index
      %16 = vector.load %arg5[%c0_14, %c0_15] : memref<16x32xf32, #tpu.memory_space<vmem>>, vector<16x32xf32>
      %17 = arith.addf %15, %16 : vector<16x32xf32>
      %c0_16 = arith.constant 0 : index
      %c0_17 = arith.constant 0 : index
      %18 = vector.load %arg6[%c0_16, %c0_17] : memref<1x32xf32, #tpu.memory_space<vmem>>, vector<1x32xf32>
      %c0_18 = arith.constant 0 : index
      %c0_19 = arith.constant 0 : index
      %19 = vector.load %arg7[%c0_18, %c0_19] : memref<1x32xf32, #tpu.memory_space<vmem>>, vector<1x32xf32>
      %cst_20 = arith.constant dense<0.000000e+00> : vector<16xf32>
      %20 = vector.multi_reduction <add>, %17, %cst_20 [1] : vector<16x32xf32> to vector<16xf32>
      %21 = vector.shape_cast %20 : vector<16xf32> to vector<16x1xf32>
      %cst_21 = arith.constant 3.200000e+01 : f32
      %22 = vector.broadcast %cst_21 : f32 to vector<16x1xf32>
      %23 = arith.divf %21, %22 : vector<16x1xf32>
      %24 = vector.broadcast %23 : vector<16x1xf32> to vector<16x32xf32>
      %25 = arith.subf %17, %24 : vector<16x32xf32>
      %26 = arith.mulf %25, %25 : vector<16x32xf32>
      %cst_22 = arith.constant dense<0.000000e+00> : vector<16xf32>
      %27 = vector.multi_reduction <add>, %26, %cst_22 [1] : vector<16x32xf32> to vector<16xf32>
      %28 = vector.shape_cast %27 : vector<16xf32> to vector<16x1xf32>
      %cst_23 = arith.constant 3.200000e+01 : f32
      %29 = vector.broadcast %cst_23 : f32 to vector<16x1xf32>
      %30 = arith.divf %28, %29 : vector<16x1xf32>
      %31 = vector.broadcast %23 : vector<16x1xf32> to vector<16x32xf32>
      %32 = arith.subf %17, %31 : vector<16x32xf32>
      %cst_24 = arith.constant 9.99999996E-13 : f32
      %33 = vector.broadcast %cst_24 : f32 to vector<16x1xf32>
      %34 = arith.addf %30, %33 : vector<16x1xf32>
      %35 = math.rsqrt %34 : vector<16x1xf32>
      %36 = vector.broadcast %35 : vector<16x1xf32> to vector<16x32xf32>
      %37 = arith.mulf %32, %36 : vector<16x32xf32>
      %38 = vector.broadcast %18 : vector<1x32xf32> to vector<16x32xf32>
      %39 = arith.mulf %37, %38 : vector<16x32xf32>
      %40 = vector.broadcast %19 : vector<1x32xf32> to vector<16x32xf32>
      %41 = arith.addf %39, %40 : vector<16x32xf32>
      %c0_25 = arith.constant 0 : index
      %c0_26 = arith.constant 0 : index
      %42 = vector.load %arg8[%c0_25, %c0_26] : memref<16x32xf32, #tpu.memory_space<vmem>>, vector<16x32xf32>
      tpu.vector_store %arg8[%c0_25, %c0_26], %41 {strides = array<i32>} : memref<16x32xf32, #tpu.memory_space<vmem>>, vector<16x32xf32>,
    } else {
    }
    return
  }
  func.func @transform_0(%arg0: i32, %arg1: i32) -> (i32, i32) {
    %c0_i32 = arith.constant 0 : i32
    return %arg0, %arg1 : i32, i32
  }
  func.func @transform_1(%arg0: i32, %arg1: i32) -> (i32, i32) {
    %c0_i32 = arith.constant 0 : i32
    %c0_i32_0 = arith.constant 0 : i32
    return %arg1, %c0_i32 : i32, i32
  }
  func.func @transform_2(%arg0: i32, %arg1: i32) -> (i32, i32) {
    %c0_i32 = arith.constant 0 : i32
    %c0_i32_0 = arith.constant 0 : i32
    %c0_i32_1 = arith.constant 0 : i32
    return %c0_i32, %c0_i32_0 : i32, i32
  }
  func.func @transform_3(%arg0: i32, %arg1: i32) -> (i32, i32) {
    %c0_i32 = arith.constant 0 : i32
    %c0_i32_0 = arith.constant 0 : i32
    return %arg0, %c0_i32 : i32, i32
  }
  func.func @transform_4(%arg0: i32, %arg1: i32) -> (i32, i32) {
    %c0_i32 = arith.constant 0 : i32
    %c0_i32_0 = arith.constant 0 : i32
    %c0_i32_1 = arith.constant 0 : i32
    return %c0_i32, %c0_i32_0 : i32, i32
  }
  func.func @transform_5(%arg0: i32, %arg1: i32) -> (i32, i32) {
    %c0_i32 = arith.constant 0 : i32
    %c0_i32_0 = arith.constant 0 : i32
    %c0_i32_1 = arith.constant 0 : i32
    return %c0_i32, %c0_i32_0 : i32, i32
  }
  func.func @transform_6(%arg0: i32, %arg1: i32) -> (i32, i32) {
    %c0_i32 = arith.constant 0 : i32
    %c0_i32_0 = arith.constant 0 : i32
    return %arg0, %c0_i32 : i32, i32
  }
}

module attributes {stable_mosaic.version = 11 : i64} {
  func.func @_linear_kernel(%arg0: i32, %arg1: i32, %arg2: i32, %arg3: memref<8x32xf32, #tpu.memory_space<vmem>>, %arg4: memref<32x32xbf16, #tpu.memory_space<vmem>>, %arg5: memref<1x32xf32, #tpu.memory_space<vmem>>, %arg6: memref<8x32xf32, #tpu.memory_space<vmem>>, %arg7: memref<8x32xf32, #tpu.memory_space<vmem>>) attributes {dimension_semantics = [#tpu.dimension_semantics<parallel>, #tpu.dimension_semantics<parallel>, #tpu.dimension_semantics<arbitrary>], iteration_bounds = array<i64: 1, 1, 1>, scalar_prefetch = 0 : i64, scratch_operands = 1 : i64, tpu.core_type = #tpu.core_type<tc>, window_params = [{transform_indices = @transform_0, window_bounds = array<i64: 8, 32>}, {transform_indices = @transform_1, window_bounds = array<i64: 32, 32>}, {transform_indices = @transform_2, window_bounds = array<i64: 1, 32>}, {transform_indices = @transform_3, window_bounds = array<i64: 8, 32>}]} {
    %c0_i32 = arith.constant 0 : i32
    %0 = arith.cmpi eq, %arg2, %c0_i32 : i32
    %1 = arith.extui %0 : i1 to i32
    %c0_i32_0 = arith.constant 0 : i32
    %2 = arith.cmpi ne, %1, %c0_i32_0 : i32
    scf.if %2 {
      %cst_10 = arith.constant 0.000000e+00 : f32
      %13 = vector.broadcast %cst_10 : f32 to vector<8x32xf32>
      %c0_11 = arith.constant 0 : index
      %c0_12 = arith.constant 0 : index
      %14 = vector.load %arg7[%c0_11, %c0_12] : memref<8x32xf32, #tpu.memory_space<vmem>>, vector<8x32xf32>
      tpu.vector_store %arg7[%c0_11, %c0_12], %13 {strides = array<i32>} : memref<8x32xf32, #tpu.memory_space<vmem>>, vector<8x32xf32>,
    } else {
    }
    %c0 = arith.constant 0 : index
    %c0_1 = arith.constant 0 : index
    %3 = vector.load %arg7[%c0, %c0_1] : memref<8x32xf32, #tpu.memory_space<vmem>>, vector<8x32xf32>
    %c0_2 = arith.constant 0 : index
    %c0_3 = arith.constant 0 : index
    %4 = vector.load %arg3[%c0_2, %c0_3] : memref<8x32xf32, #tpu.memory_space<vmem>>, vector<8x32xf32>
    %5 = arith.truncf %4 : vector<8x32xf32> to vector<8x32xbf16>
    %c0_4 = arith.constant 0 : index
    %c0_5 = arith.constant 0 : index
    %6 = vector.load %arg4[%c0_4, %c0_5] : memref<32x32xbf16, #tpu.memory_space<vmem>>, vector<32x32xbf16>
    %cst = arith.constant dense<0.000000e+00> : vector<8x32xf32>
    %7 = tpu.matmul %5, %6, %cst {dimension_numbers = #tpu.dot_dimension_numbers<[1], [0], [0], [1], [0, 0, 1, 1], [], []>} : vector<8x32xbf16>, vector<32x32xbf16>, vector<8x32xf32> -> vector<8x32xf32>
    %8 = arith.addf %3, %7 : vector<8x32xf32>
    %c0_6 = arith.constant 0 : index
    %c0_7 = arith.constant 0 : index
    %9 = vector.load %arg7[%c0_6, %c0_7] : memref<8x32xf32, #tpu.memory_space<vmem>>, vector<8x32xf32>
    tpu.vector_store %arg7[%c0_6, %c0_7], %8 {strides = array<i32>} : memref<8x32xf32, #tpu.memory_space<vmem>>, vector<8x32xf32>,
    %c0_i32_8 = arith.constant 0 : i32
    %10 = arith.cmpi eq, %arg2, %c0_i32_8 : i32
    %11 = arith.extui %10 : i1 to i32
    %c0_i32_9 = arith.constant 0 : i32
    %12 = arith.cmpi ne, %11, %c0_i32_9 : i32
    scf.if %12 {
      %c0_10 = arith.constant 0 : index
      %c0_11 = arith.constant 0 : index
      %13 = vector.load %arg7[%c0_10, %c0_11] : memref<8x32xf32, #tpu.memory_space<vmem>>, vector<8x32xf32>
      %c0_12 = arith.constant 0 : index
      %c0_13 = arith.constant 0 : index
      %14 = vector.load %arg5[%c0_12, %c0_13] : memref<1x32xf32, #tpu.memory_space<vmem>>, vector<1x32xf32>
      %15 = vector.broadcast %14 : vector<1x32xf32> to vector<8x32xf32>
      %16 = arith.addf %13, %15 : vector<8x32xf32>
      %cst_14 = arith.constant 5.000000e-01 : f32
      %17 = vector.broadcast %cst_14 : f32 to vector<8x32xf32>
      %18 = arith.mulf %17, %16 : vector<8x32xf32>
      %cst_15 = arith.constant 4.471500e-02 : f32
      %19 = vector.broadcast %cst_15 : f32 to vector<8x32xf32>
      %20 = arith.mulf %19, %16 : vector<8x32xf32>
      %21 = arith.mulf %20, %16 : vector<8x32xf32>
      %22 = arith.mulf %21, %16 : vector<8x32xf32>
      %23 = arith.addf %16, %22 : vector<8x32xf32>
      %cst_16 = arith.constant 0.797884583 : f32
      %24 = vector.broadcast %cst_16 : f32 to vector<8x32xf32>
      %25 = arith.mulf %24, %23 : vector<8x32xf32>
      %26 = math.tanh %25 : vector<8x32xf32>
      %cst_17 = arith.constant 1.000000e+00 : f32
      %27 = vector.broadcast %cst_17 : f32 to vector<8x32xf32>
      %28 = arith.addf %27, %26 : vector<8x32xf32>
      %29 = arith.mulf %18, %28 : vector<8x32xf32>
      %c0_18 = arith.constant 0 : index
      %c0_19 = arith.constant 0 : index
      %30 = vector.load %arg6[%c0_18, %c0_19] : memref<8x32xf32, #tpu.memory_space<vmem>>, vector<8x32xf32>
      tpu.vector_store %arg6[%c0_18, %c0_19], %29 {strides = array<i32>} : memref<8x32xf32, #tpu.memory_space<vmem>>, vector<8x32xf32>,
    } else {
    }
    return
  }
  func.func @transform_0(%arg0: i32, %arg1: i32, %arg2: i32) -> (i32, i32) {
    %c0_i32 = arith.constant 0 : i32
    return %arg0, %arg2 : i32, i32
  }
  func.func @transform_1(%arg0: i32, %arg1: i32, %arg2: i32) -> (i32, i32) {
    %c0_i32 = arith.constant 0 : i32
    return %arg2, %arg1 : i32, i32
  }
  func.func @transform_2(%arg0: i32, %arg1: i32, %arg2: i32) -> (i32, i32) {
    %c0_i32 = arith.constant 0 : i32
    %c0_i32_0 = arith.constant 0 : i32
    return %c0_i32, %arg1 : i32, i32
  }
  func.func @transform_3(%arg0: i32, %arg1: i32, %arg2: i32) -> (i32, i32) {
    %c0_i32 = arith.constant 0 : i32
    return %arg0, %arg1 : i32, i32
  }
}

module attributes {stable_mosaic.version = 11 : i64} {
  func.func @_ln_kernel(%arg0: i32, %arg1: memref<8x32xf32, #tpu.memory_space<vmem>>, %arg2: memref<1x32xf32, #tpu.memory_space<vmem>>, %arg3: memref<1x32xf32, #tpu.memory_space<vmem>>, %arg4: memref<8x32xf32, #tpu.memory_space<vmem>>) attributes {dimension_semantics = [#tpu.dimension_semantics<parallel>], iteration_bounds = array<i64: 1>, scalar_prefetch = 0 : i64, scratch_operands = 0 : i64, tpu.core_type = #tpu.core_type<tc>, window_params = [{transform_indices = @transform_0, window_bounds = array<i64: 8, 32>}, {pipeline_mode = #tpu.pipeline_mode<synchronous>, transform_indices = @transform_1, window_bounds = array<i64: 1, 32>}, {pipeline_mode = #tpu.pipeline_mode<synchronous>, transform_indices = @transform_2, window_bounds = array<i64: 1, 32>}, {transform_indices = @transform_3, window_bounds = array<i64: 8, 32>}]} {
    %c0 = arith.constant 0 : index
    %c0_0 = arith.constant 0 : index
    %0 = vector.load %arg1[%c0, %c0_0] : memref<8x32xf32, #tpu.memory_space<vmem>>, vector<8x32xf32>
    %c0_1 = arith.constant 0 : index
    %c0_2 = arith.constant 0 : index
    %1 = vector.load %arg2[%c0_1, %c0_2] : memref<1x32xf32, #tpu.memory_space<vmem>>, vector<1x32xf32>
    %c0_3 = arith.constant 0 : index
    %c0_4 = arith.constant 0 : index
    %2 = vector.load %arg3[%c0_3, %c0_4] : memref<1x32xf32, #tpu.memory_space<vmem>>, vector<1x32xf32>
    %cst = arith.constant dense<0.000000e+00> : vector<8xf32>
    %3 = vector.multi_reduction <add>, %0, %cst [1] : vector<8x32xf32> to vector<8xf32>
    %4 = vector.shape_cast %3 : vector<8xf32> to vector<8x1xf32>
    %cst_5 = arith.constant 3.200000e+01 : f32
    %5 = vector.broadcast %cst_5 : f32 to vector<8x1xf32>
    %6 = arith.divf %4, %5 : vector<8x1xf32>
    %7 = vector.broadcast %6 : vector<8x1xf32> to vector<8x32xf32>
    %8 = arith.subf %0, %7 : vector<8x32xf32>
    %9 = arith.mulf %8, %8 : vector<8x32xf32>
    %cst_6 = arith.constant dense<0.000000e+00> : vector<8xf32>
    %10 = vector.multi_reduction <add>, %9, %cst_6 [1] : vector<8x32xf32> to vector<8xf32>
    %11 = vector.shape_cast %10 : vector<8xf32> to vector<8x1xf32>
    %cst_7 = arith.constant 3.200000e+01 : f32
    %12 = vector.broadcast %cst_7 : f32 to vector<8x1xf32>
    %13 = arith.divf %11, %12 : vector<8x1xf32>
    %14 = vector.broadcast %6 : vector<8x1xf32> to vector<8x32xf32>
    %15 = arith.subf %0, %14 : vector<8x32xf32>
    %cst_8 = arith.constant 9.99999996E-13 : f32
    %16 = vector.broadcast %cst_8 : f32 to vector<8x1xf32>
    %17 = arith.addf %13, %16 : vector<8x1xf32>
    %18 = math.rsqrt %17 : vector<8x1xf32>
    %19 = vector.broadcast %18 : vector<8x1xf32> to vector<8x32xf32>
    %20 = arith.mulf %15, %19 : vector<8x32xf32>
    %21 = vector.broadcast %1 : vector<1x32xf32> to vector<8x32xf32>
    %22 = arith.mulf %20, %21 : vector<8x32xf32>
    %23 = vector.broadcast %2 : vector<1x32xf32> to vector<8x32xf32>
    %24 = arith.addf %22, %23 : vector<8x32xf32>
    %c0_9 = arith.constant 0 : index
    %c0_10 = arith.constant 0 : index
    %25 = vector.load %arg4[%c0_9, %c0_10] : memref<8x32xf32, #tpu.memory_space<vmem>>, vector<8x32xf32>
    tpu.vector_store %arg4[%c0_9, %c0_10], %24 {strides = array<i32>} : memref<8x32xf32, #tpu.memory_space<vmem>>, vector<8x32xf32>,
    return
  }
  func.func @transform_0(%arg0: i32) -> (i32, i32) {
    %c0_i32 = arith.constant 0 : i32
    %c0_i32_0 = arith.constant 0 : i32
    return %arg0, %c0_i32 : i32, i32
  }
  func.func @transform_1(%arg0: i32) -> (i32, i32) {
    %c0_i32 = arith.constant 0 : i32
    %c0_i32_0 = arith.constant 0 : i32
    %c0_i32_1 = arith.constant 0 : i32
    return %c0_i32, %c0_i32_0 : i32, i32
  }
  func.func @transform_2(%arg0: i32) -> (i32, i32) {
    %c0_i32 = arith.constant 0 : i32
    %c0_i32_0 = arith.constant 0 : i32
    %c0_i32_1 = arith.constant 0 : i32
    return %c0_i32, %c0_i32_0 : i32, i32
  }
  func.func @transform_3(%arg0: i32) -> (i32, i32) {
    %c0_i32 = arith.constant 0 : i32
    %c0_i32_0 = arith.constant 0 : i32
    return %arg0, %c0_i32 : i32, i32
  }
}

module attributes {stable_mosaic.version = 11 : i64} {
  func.func @_linear_kernel(%arg0: i32, %arg1: i32, %arg2: i32, %arg3: memref<2x32xf32, #tpu.memory_space<vmem>>, %arg4: memref<32x2xbf16, #tpu.memory_space<vmem>>, %arg5: memref<1x2xf32, #tpu.memory_space<vmem>>, %arg6: memref<2x2xf32, #tpu.memory_space<vmem>>, %arg7: memref<2x2xf32, #tpu.memory_space<vmem>>) attributes {dimension_semantics = [#tpu.dimension_semantics<parallel>, #tpu.dimension_semantics<parallel>, #tpu.dimension_semantics<arbitrary>], iteration_bounds = array<i64: 1, 1, 1>, scalar_prefetch = 0 : i64, scratch_operands = 1 : i64, tpu.core_type = #tpu.core_type<tc>, window_params = [{transform_indices = @transform_0, window_bounds = array<i64: 2, 32>}, {transform_indices = @transform_1, window_bounds = array<i64: 32, 2>}, {transform_indices = @transform_2, window_bounds = array<i64: 1, 2>}, {transform_indices = @transform_3, window_bounds = array<i64: 2, 2>}]} {
    %c0_i32 = arith.constant 0 : i32
    %0 = arith.cmpi eq, %arg2, %c0_i32 : i32
    %1 = arith.extui %0 : i1 to i32
    %c0_i32_0 = arith.constant 0 : i32
    %2 = arith.cmpi ne, %1, %c0_i32_0 : i32
    scf.if %2 {
      %cst_10 = arith.constant 0.000000e+00 : f32
      %13 = vector.broadcast %cst_10 : f32 to vector<2x2xf32>
      %c0_11 = arith.constant 0 : index
      %c0_12 = arith.constant 0 : index
      %14 = vector.load %arg7[%c0_11, %c0_12] : memref<2x2xf32, #tpu.memory_space<vmem>>, vector<2x2xf32>
      tpu.vector_store %arg7[%c0_11, %c0_12], %13 {strides = array<i32>} : memref<2x2xf32, #tpu.memory_space<vmem>>, vector<2x2xf32>,
    } else {
    }
    %c0 = arith.constant 0 : index
    %c0_1 = arith.constant 0 : index
    %3 = vector.load %arg7[%c0, %c0_1] : memref<2x2xf32, #tpu.memory_space<vmem>>, vector<2x2xf32>
    %c0_2 = arith.constant 0 : index
    %c0_3 = arith.constant 0 : index
    %4 = vector.load %arg3[%c0_2, %c0_3] : memref<2x32xf32, #tpu.memory_space<vmem>>, vector<2x32xf32>
    %5 = arith.truncf %4 : vector<2x32xf32> to vector<2x32xbf16>
    %c0_4 = arith.constant 0 : index
    %c0_5 = arith.constant 0 : index
    %6 = vector.load %arg4[%c0_4, %c0_5] : memref<32x2xbf16, #tpu.memory_space<vmem>>, vector<32x2xbf16>
    %cst = arith.constant dense<0.000000e+00> : vector<2x2xf32>
    %7 = tpu.matmul %5, %6, %cst {dimension_numbers = #tpu.dot_dimension_numbers<[1], [0], [0], [1], [0, 0, 1, 1], [], []>} : vector<2x32xbf16>, vector<32x2xbf16>, vector<2x2xf32> -> vector<2x2xf32>
    %8 = arith.addf %3, %7 : vector<2x2xf32>
    %c0_6 = arith.constant 0 : index
    %c0_7 = arith.constant 0 : index
    %9 = vector.load %arg7[%c0_6, %c0_7] : memref<2x2xf32, #tpu.memory_space<vmem>>, vector<2x2xf32>
    tpu.vector_store %arg7[%c0_6, %c0_7], %8 {strides = array<i32>} : memref<2x2xf32, #tpu.memory_space<vmem>>, vector<2x2xf32>,
    %c0_i32_8 = arith.constant 0 : i32
    %10 = arith.cmpi eq, %arg2, %c0_i32_8 : i32
    %11 = arith.extui %10 : i1 to i32
    %c0_i32_9 = arith.constant 0 : i32
    %12 = arith.cmpi ne, %11, %c0_i32_9 : i32
    scf.if %12 {
      %c0_10 = arith.constant 0 : index
      %c0_11 = arith.constant 0 : index
      %13 = vector.load %arg7[%c0_10, %c0_11] : memref<2x2xf32, #tpu.memory_space<vmem>>, vector<2x2xf32>
      %c0_12 = arith.constant 0 : index
      %c0_13 = arith.constant 0 : index
      %14 = vector.load %arg5[%c0_12, %c0_13] : memref<1x2xf32, #tpu.memory_space<vmem>>, vector<1x2xf32>
      %15 = vector.broadcast %14 : vector<1x2xf32> to vector<2x2xf32>
      %16 = arith.addf %13, %15 : vector<2x2xf32>
      %c0_14 = arith.constant 0 : index
      %c0_15 = arith.constant 0 : index
      %17 = vector.load %arg6[%c0_14, %c0_15] : memref<2x2xf32, #tpu.memory_space<vmem>>, vector<2x2xf32>
      tpu.vector_store %arg6[%c0_14, %c0_15], %16 {strides = array<i32>} : memref<2x2xf32, #tpu.memory_space<vmem>>, vector<2x2xf32>,
    } else {
    }
    return
  }
  func.func @transform_0(%arg0: i32, %arg1: i32, %arg2: i32) -> (i32, i32) {
    %c0_i32 = arith.constant 0 : i32
    return %arg0, %arg2 : i32, i32
  }
  func.func @transform_1(%arg0: i32, %arg1: i32, %arg2: i32) -> (i32, i32) {
    %c0_i32 = arith.constant 0 : i32
    return %arg2, %arg1 : i32, i32
  }
  func.func @transform_2(%arg0: i32, %arg1: i32, %arg2: i32) -> (i32, i32) {
    %c0_i32 = arith.constant 0 : i32
    %c0_i32_0 = arith.constant 0 : i32
    return %c0_i32, %arg1 : i32, i32
  }
  func.func @transform_3(%arg0: i32, %arg1: i32, %arg2: i32) -> (i32, i32) {
    %c0_i32 = arith.constant 0 : i32
    return %arg0, %arg1 : i32, i32
  }
}

module attributes {stable_mosaic.version = 11 : i64} {
  func.func @_linear_kernel(%arg0: i32, %arg1: i32, %arg2: i32, %arg3: memref<8x32xf32, #tpu.memory_space<vmem>>, %arg4: memref<32x512xbf16, #tpu.memory_space<vmem>>, %arg5: memref<1x512xf32, #tpu.memory_space<vmem>>, %arg6: memref<8x512xf32, #tpu.memory_space<vmem>>, %arg7: memref<8x512xf32, #tpu.memory_space<vmem>>) attributes {dimension_semantics = [#tpu.dimension_semantics<parallel>, #tpu.dimension_semantics<parallel>, #tpu.dimension_semantics<arbitrary>], iteration_bounds = array<i64: 1, 1, 1>, scalar_prefetch = 0 : i64, scratch_operands = 1 : i64, tpu.core_type = #tpu.core_type<tc>, window_params = [{transform_indices = @transform_0, window_bounds = array<i64: 8, 32>}, {transform_indices = @transform_1, window_bounds = array<i64: 32, 512>}, {transform_indices = @transform_2, window_bounds = array<i64: 1, 512>}, {transform_indices = @transform_3, window_bounds = array<i64: 8, 512>}]} {
    %c0_i32 = arith.constant 0 : i32
    %0 = arith.cmpi eq, %arg2, %c0_i32 : i32
    %1 = arith.extui %0 : i1 to i32
    %c0_i32_0 = arith.constant 0 : i32
    %2 = arith.cmpi ne, %1, %c0_i32_0 : i32
    scf.if %2 {
      %cst_10 = arith.constant 0.000000e+00 : f32
      %13 = vector.broadcast %cst_10 : f32 to vector<8x512xf32>
      %c0_11 = arith.constant 0 : index
      %c0_12 = arith.constant 0 : index
      %14 = vector.load %arg7[%c0_11, %c0_12] : memref<8x512xf32, #tpu.memory_space<vmem>>, vector<8x512xf32>
      tpu.vector_store %arg7[%c0_11, %c0_12], %13 {strides = array<i32>} : memref<8x512xf32, #tpu.memory_space<vmem>>, vector<8x512xf32>,
    } else {
    }
    %c0 = arith.constant 0 : index
    %c0_1 = arith.constant 0 : index
    %3 = vector.load %arg7[%c0, %c0_1] : memref<8x512xf32, #tpu.memory_space<vmem>>, vector<8x512xf32>
    %c0_2 = arith.constant 0 : index
    %c0_3 = arith.constant 0 : index
    %4 = vector.load %arg3[%c0_2, %c0_3] : memref<8x32xf32, #tpu.memory_space<vmem>>, vector<8x32xf32>
    %5 = arith.truncf %4 : vector<8x32xf32> to vector<8x32xbf16>
    %c0_4 = arith.constant 0 : index
    %c0_5 = arith.constant 0 : index
    %6 = vector.load %arg4[%c0_4, %c0_5] : memref<32x512xbf16, #tpu.memory_space<vmem>>, vector<32x512xbf16>
    %cst = arith.constant dense<0.000000e+00> : vector<8x512xf32>
    %7 = tpu.matmul %5, %6, %cst {dimension_numbers = #tpu.dot_dimension_numbers<[1], [0], [0], [1], [0, 0, 1, 1], [], []>} : vector<8x32xbf16>, vector<32x512xbf16>, vector<8x512xf32> -> vector<8x512xf32>
    %8 = arith.addf %3, %7 : vector<8x512xf32>
    %c0_6 = arith.constant 0 : index
    %c0_7 = arith.constant 0 : index
    %9 = vector.load %arg7[%c0_6, %c0_7] : memref<8x512xf32, #tpu.memory_space<vmem>>, vector<8x512xf32>
    tpu.vector_store %arg7[%c0_6, %c0_7], %8 {strides = array<i32>} : memref<8x512xf32, #tpu.memory_space<vmem>>, vector<8x512xf32>,
    %c0_i32_8 = arith.constant 0 : i32
    %10 = arith.cmpi eq, %arg2, %c0_i32_8 : i32
    %11 = arith.extui %10 : i1 to i32
    %c0_i32_9 = arith.constant 0 : i32
    %12 = arith.cmpi ne, %11, %c0_i32_9 : i32
    scf.if %12 {
      %c0_10 = arith.constant 0 : index
      %c0_11 = arith.constant 0 : index
      %13 = vector.load %arg7[%c0_10, %c0_11] : memref<8x512xf32, #tpu.memory_space<vmem>>, vector<8x512xf32>
      %c0_12 = arith.constant 0 : index
      %c0_13 = arith.constant 0 : index
      %14 = vector.load %arg5[%c0_12, %c0_13] : memref<1x512xf32, #tpu.memory_space<vmem>>, vector<1x512xf32>
      %15 = vector.broadcast %14 : vector<1x512xf32> to vector<8x512xf32>
      %16 = arith.addf %13, %15 : vector<8x512xf32>
      %c0_14 = arith.constant 0 : index
      %c0_15 = arith.constant 0 : index
      %17 = vector.load %arg6[%c0_14, %c0_15] : memref<8x512xf32, #tpu.memory_space<vmem>>, vector<8x512xf32>
      tpu.vector_store %arg6[%c0_14, %c0_15], %16 {strides = array<i32>} : memref<8x512xf32, #tpu.memory_space<vmem>>, vector<8x512xf32>,
    } else {
    }
    return
  }
  func.func @transform_0(%arg0: i32, %arg1: i32, %arg2: i32) -> (i32, i32) {
    %c0_i32 = arith.constant 0 : i32
    return %arg0, %arg2 : i32, i32
  }
  func.func @transform_1(%arg0: i32, %arg1: i32, %arg2: i32) -> (i32, i32) {
    %c0_i32 = arith.constant 0 : i32
    return %arg2, %arg1 : i32, i32
  }
  func.func @transform_2(%arg0: i32, %arg1: i32, %arg2: i32) -> (i32, i32) {
    %c0_i32 = arith.constant 0 : i32
    %c0_i32_0 = arith.constant 0 : i32
    return %c0_i32, %arg1 : i32, i32
  }
  func.func @transform_3(%arg0: i32, %arg1: i32, %arg2: i32) -> (i32, i32) {
    %c0_i32 = arith.constant 0 : i32
    return %arg0, %arg1 : i32, i32
  }
}

module attributes {stable_mosaic.version = 11 : i64} {
  func.func @_linear_kernel(%arg0: i32, %arg1: i32, %arg2: i32, %arg3: memref<2x32xf32, #tpu.memory_space<vmem>>, %arg4: memref<32x32xbf16, #tpu.memory_space<vmem>>, %arg5: memref<1x32xf32, #tpu.memory_space<vmem>>, %arg6: memref<2x32xf32, #tpu.memory_space<vmem>>, %arg7: memref<2x32xf32, #tpu.memory_space<vmem>>) attributes {dimension_semantics = [#tpu.dimension_semantics<parallel>, #tpu.dimension_semantics<parallel>, #tpu.dimension_semantics<arbitrary>], iteration_bounds = array<i64: 1, 1, 1>, scalar_prefetch = 0 : i64, scratch_operands = 1 : i64, tpu.core_type = #tpu.core_type<tc>, window_params = [{transform_indices = @transform_0, window_bounds = array<i64: 2, 32>}, {transform_indices = @transform_1, window_bounds = array<i64: 32, 32>}, {transform_indices = @transform_2, window_bounds = array<i64: 1, 32>}, {transform_indices = @transform_3, window_bounds = array<i64: 2, 32>}]} {
    %c0_i32 = arith.constant 0 : i32
    %0 = arith.cmpi eq, %arg2, %c0_i32 : i32
    %1 = arith.extui %0 : i1 to i32
    %c0_i32_0 = arith.constant 0 : i32
    %2 = arith.cmpi ne, %1, %c0_i32_0 : i32
    scf.if %2 {
      %cst_10 = arith.constant 0.000000e+00 : f32
      %13 = vector.broadcast %cst_10 : f32 to vector<2x32xf32>
      %c0_11 = arith.constant 0 : index
      %c0_12 = arith.constant 0 : index
      %14 = vector.load %arg7[%c0_11, %c0_12] : memref<2x32xf32, #tpu.memory_space<vmem>>, vector<2x32xf32>
      tpu.vector_store %arg7[%c0_11, %c0_12], %13 {strides = array<i32>} : memref<2x32xf32, #tpu.memory_space<vmem>>, vector<2x32xf32>,
    } else {
    }
    %c0 = arith.constant 0 : index
    %c0_1 = arith.constant 0 : index
    %3 = vector.load %arg7[%c0, %c0_1] : memref<2x32xf32, #tpu.memory_space<vmem>>, vector<2x32xf32>
    %c0_2 = arith.constant 0 : index
    %c0_3 = arith.constant 0 : index
    %4 = vector.load %arg3[%c0_2, %c0_3] : memref<2x32xf32, #tpu.memory_space<vmem>>, vector<2x32xf32>
    %5 = arith.truncf %4 : vector<2x32xf32> to vector<2x32xbf16>
    %c0_4 = arith.constant 0 : index
    %c0_5 = arith.constant 0 : index
    %6 = vector.load %arg4[%c0_4, %c0_5] : memref<32x32xbf16, #tpu.memory_space<vmem>>, vector<32x32xbf16>
    %cst = arith.constant dense<0.000000e+00> : vector<2x32xf32>
    %7 = tpu.matmul %5, %6, %cst {dimension_numbers = #tpu.dot_dimension_numbers<[1], [0], [0], [1], [0, 0, 1, 1], [], []>} : vector<2x32xbf16>, vector<32x32xbf16>, vector<2x32xf32> -> vector<2x32xf32>
    %8 = arith.addf %3, %7 : vector<2x32xf32>
    %c0_6 = arith.constant 0 : index
    %c0_7 = arith.constant 0 : index
    %9 = vector.load %arg7[%c0_6, %c0_7] : memref<2x32xf32, #tpu.memory_space<vmem>>, vector<2x32xf32>
    tpu.vector_store %arg7[%c0_6, %c0_7], %8 {strides = array<i32>} : memref<2x32xf32, #tpu.memory_space<vmem>>, vector<2x32xf32>,
    %c0_i32_8 = arith.constant 0 : i32
    %10 = arith.cmpi eq, %arg2, %c0_i32_8 : i32
    %11 = arith.extui %10 : i1 to i32
    %c0_i32_9 = arith.constant 0 : i32
    %12 = arith.cmpi ne, %11, %c0_i32_9 : i32
    scf.if %12 {
      %c0_10 = arith.constant 0 : index
      %c0_11 = arith.constant 0 : index
      %13 = vector.load %arg7[%c0_10, %c0_11] : memref<2x32xf32, #tpu.memory_space<vmem>>, vector<2x32xf32>
      %c0_12 = arith.constant 0 : index
      %c0_13 = arith.constant 0 : index
      %14 = vector.load %arg5[%c0_12, %c0_13] : memref<1x32xf32, #tpu.memory_space<vmem>>, vector<1x32xf32>
      %15 = vector.broadcast %14 : vector<1x32xf32> to vector<2x32xf32>
      %16 = arith.addf %13, %15 : vector<2x32xf32>
      %17 = math.tanh %16 : vector<2x32xf32>
      %c0_14 = arith.constant 0 : index
      %c0_15 = arith.constant 0 : index
      %18 = vector.load %arg6[%c0_14, %c0_15] : memref<2x32xf32, #tpu.memory_space<vmem>>, vector<2x32xf32>
      tpu.vector_store %arg6[%c0_14, %c0_15], %17 {strides = array<i32>} : memref<2x32xf32, #tpu.memory_space<vmem>>, vector<2x32xf32>,
    } else {
    }
    return
  }
  func.func @transform_0(%arg0: i32, %arg1: i32, %arg2: i32) -> (i32, i32) {
    %c0_i32 = arith.constant 0 : i32
    return %arg0, %arg2 : i32, i32
  }
  func.func @transform_1(%arg0: i32, %arg1: i32, %arg2: i32) -> (i32, i32) {
    %c0_i32 = arith.constant 0 : i32
    return %arg2, %arg1 : i32, i32
  }
  func.func @transform_2(%arg0: i32, %arg1: i32, %arg2: i32) -> (i32, i32) {
    %c0_i32 = arith.constant 0 : i32
    %c0_i32_0 = arith.constant 0 : i32
    return %c0_i32, %arg1 : i32, i32
  }
  func.func @transform_3(%arg0: i32, %arg1: i32, %arg2: i32) -> (i32, i32) {
    %c0_i32 = arith.constant 0 : i32
    return %arg0, %arg1 : i32, i32
  }
}

</mosaic_0001>

<bundles_post_ra>
// kernel: bert_pretrain_forward.18
= control target key start
LH: loop header
LB: loop body
LE: loop exit
PB: predicated region body
PF: predicated region fallthrough
CT: control target
= control target key end

     0   :  { %s654_s9 = smov 0   ;;  %s656_s10 = smov 0   ;;  %s739_s0 = inlined_call_operand.vmem [shape: bf16[2,8,96], index: 0, kind: input, shape index: {}]   ;;  %s740_s1 = inlined_call_operand.vmem [shape: f32[2,1,8], index: 1, kind: input, shape index: {}]   ;;  %s741_s2 = inlined_call_operand.vmem [shape: bf16[2,8,32], index: 2, kind: output, shape index: {}]  }
   0x1   :  { %s658_s11 = smov 0  }
   0x2 LB: > { %s24_s12 = sadd.s32 1, %s619_s10  ;;  %p534_p0 = scmp.ge.s32.totalorder %s623_s11, 1  ;;  %s623_s11 = sphi %s658_s11, %s12_s11   ;;  %s619_s10 = sphi %s656_s10, %s743_s10   ;;  %s615_s9 = sphi %s654_s9, %s742_s9  }
   0x3   : > { %p26_p1 = scmp.ge.s32.totalorder %s24_s12, 2  ;;  %p138_p2 = scmp.lt.s32.totalorder %s623_s11, 3 }
   0x5   : > { %s745_s12 = smov (%p26_p1, %s24_s12), 0  ;;  %p139_p3 = pnand %p534_p0, %p138_p2 }
   0x6   : > { %p167_p4 = scmp.lt.s32.totalorder (!%p139_p3), %s615_s9, 1  ;;  %s625_s17 = smov (!%p139_p3), 120  }
   0x7   : > { %142 = sbr.rel (%p139_p3) target bundleno = 1202 (0x4b2), region = 28  ;;  %s626_s18 = smov (!%p139_p3), 96  }
   0x8   : > { %s627_s19 = smov (!%p139_p3), 104   ;;  %s628_s20 = smov (!%p139_p3), 112  }
   0x9   : > { %s629_s21 = smov (!%p139_p3), 72   ;;  %s630_s22 = smov (!%p139_p3), 48  }
   0xa   : > { %s631_s23 = smov (!%p139_p3), 80   ;;  %s632_s24 = smov (!%p139_p3), 56  }
   0xb   : > { %s633_s28 = smov (!%p139_p3), 88   ;;  %s634_s29 = smov (!%p139_p3), 40  }
   0xc   : > { %s747_s9 = smov (!%p167_p4, %s615_s9), 1  ;;  %vm194_vm0 = vcmask 64512   ;;  %vm236_vm1 = vcmask 1043456   ;;  %s635_s30 = smov 64   ;;  %vm440_vm2 = vcmask 130048   ;;  %vm442_vm3 = vcmask 195584  }
   0xd   : > { %s535_s13 = sshll.u32 %s747_s9, 2  ;;  %s176_s27 = scalar_lea.vmem %s740_s1, %s747_s9  ;;  %vm445_vm4 = vcmask 257024  }
   0xe   : > { %s173_s16 = scalar_lea.vmem %s739_s0, %s535_s13  ;;  %v185_v8 = vld [vmem:[%s176_s27] sm:$0x1]  ;;  %s636_s3 = smov 8  }
   0xf   : > { %v188_v0 = vld [vmem:[%s173_s16] sm:$0xf]  ;;  %v186_v9 = vsub.f32 1.0, %v185_v8  ;;  %s637_s4 = smov 16   ;;  %s638_s5 = smov 24  }
  0x10   : > { %v190_v1 = vunpack.c.l.b16 %v188_v0  ;;  %s183_s8 = scalar_lea.vmem %s741_s2, %s535_s13 }
  0x11   : > { %v187_v10 = vmul.f32 -10000.0, %v186_v9 }
  0x12   : > { %v680_v2 = vpack.c.b16 %v190_v1, %v190_v1 }
  0x13   : > { %v216_v11 = vperm.slane %v187_v10, 0 }
  0x14   : > { %192 = vrot.lane.b32.xlu0 %v680_v2, %s625_s17  ;;  %255 = vrot.lane.b32.xlu1 %v680_v2, %s626_s18 }
  0x15   : > { %253 = vrot.lane.b32.xlu2 %v680_v2, %s627_s19 }
  0x1d   : > { %231 = vrot.lane.b32.xlu2 %v680_v2, %s628_s20 }
  0x25   : > { %313 = vrot.lane.b32.xlu2 %v680_v2, %s629_s21 }
  0x2d   : > { %371 = vrot.lane.b32.xlu2 %v680_v2, %s630_s22 }
  0x35   : > { %311 = vrot.lane.b32.xlu2 %v680_v2, %s631_s23 }
  0x3d   : > { %369 = vrot.lane.b32.xlu2 %v680_v2, %s632_s24 }
  0x6f   : > { %v254_v7 = vpop.permute.xlu2 %253 }
  0x77   : > { %v232_v17 = vpop.permute.xlu2 %231 }
  0x78   : > { %v238_v22 = vsel %vm236_vm1, %v232_v17, 0 }
  0x79   : > { %247 = vmatpush.bf16.msra.mxu1 %v238_v22 }
  0x7f   : > { %v314_v18 = vpop.permute.xlu2 %313 }
  0x80   : > { %v319_v20 = vsel %vm194_vm0, %v314_v18, 0 }
  0x81   : > { %328 = vmatpush.bf16.xpose.msrb.mxu1 %v319_v20 }
  0x86   : > { %v193_v3 = vpop.permute.xlu0 %192  ;;  %v256_v5 = vpop.permute.xlu1 %255 }
  0x87   : > { %v199_v4 = vsel %vm194_vm0, %v193_v3, 0  ;;  %v261_v6 = vsel %vm194_vm0, %v256_v5, 0  ;;  %v372_v19 = vpop.permute.xlu2 %371 }
  0x88   : > { %208 = vmatpush.bf16.xpose.msra.mxu0 %v199_v4  ;;  %270 = vmatpush.bf16.xpose.msra.mxu2 %v261_v6  ;;  %v377_v21 = vsel %vm194_vm0, %v372_v19, 0 }
  0x8f   : > { %537 = vmatmul.msk.bf16.vlgmr.msra.gmra.mxu0 %vm194_vm0, %v188_v0  ;;  %539 = vmatmul.msk.bf16.vlgmr.msra.gmra.mxu2 %vm194_vm0, %v254_v7  ;;  %v312_v23 = vpop.permute.xlu2 %311 }
  0x90   : > { %386 = vmatpush.bf16.xpose.msrb.mxu0 %v377_v21 }
  0x97   : > { %v370_v26 = vpop.permute.xlu2 %369 }
  0x9f   : > { %543 = vmatmul.msk.bf16.vlgmr.msrb.gmra.mxu0 %vm194_vm0, %v370_v26 }
 0x10c   : > { %v210_v12 = vpop.f32.mrf.mxu0 }
 0x10d   : > { %v214_v13 = vmul.f32 0.35355338, %v210_v12 }
 0x10f   : > { %v218_v14 = vadd.f32 %v216_v11, %v214_v13 }
 0x111   : > { %v219_v15 = vsel %vm194_vm0, %v218_v14, -inf }
 0x112   : > { %220 = vmax.xlane.f32.xlu0 %v219_v15  ;;  %v272_v24 = vpop.f32.mrf.mxu2 }
 0x113   : > { %v276_v25 = vmul.f32 0.35355338, %v272_v24 }
 0x114   : > { %v212_v16 = vpop.f32.mrf.mxu0 }
 0x115   : > { %v277_v27 = vadd.f32 %v276_v25, %v216_v11 }
 0x117   : > { %v278_v29 = vsel %vm194_vm0, %v277_v27, -inf }
 0x118   : > { %279 = vmax.xlane.f32.xlu2 %v278_v29 }
 0x11a   : > { %v274_v32 = vpop.f32.mrf.mxu2 }
 0x11c   : > { %v388_v35 = vpop.f32.mrf.mxu0 }
 0x11d   : > { %v392_v36 = vmul.f32 0.35355338, %v388_v35 }
 0x11f   : > { %v393_v37 = vadd.f32 %v392_v36, %v216_v11 }
 0x121   : > { %v394_v39 = vsel %vm194_vm0, %v393_v37, -inf }
 0x124   : > { %v390_v40 = vpop.f32.mrf.mxu0 }
 0x185   : > { %v221_v28 = vpop.xlane.xlu0 %220 }
 0x186   : > { %v222_v30 = vsub.f32 %v218_v14, %v221_v28 }
 0x188   : > { %v223_v31 = vmul.f32 1.442695, %v222_v30 }
 0x18a   : > { %585 = vpow2.f32 %v223_v31 }
 0x18b   : > { %v280_v46 = vpop.xlane.xlu2 %279 }
 0x18c   : > { %v281_v47 = vsub.f32 %v277_v27, %v280_v46 }
 0x18e   : > { %v282_v48 = vmul.f32 1.442695, %v281_v47 }
 0x190   : > { %v586_v33 = vpop.eup %585 }
 0x191   : > { %v225_v34 = vsel %vm194_vm0, %v586_v33, 0.0 }
 0x192   : > { %226 = vadd.xlane.f32.xlu1 %v225_v34 }
 0x19a   : > { %395 = vmax.xlane.f32.xlu1 %v394_v39 }
 0x1b3   : > { %290 = vrot.lane.b32.xlu1 %v680_v2, %s633_s28 }
 0x1bb   : > { %406 = vrot.lane.b32.xlu1 %v680_v2, %s634_s29 }
 0x205   : > { %v227_v38 = vpop.xlane.xlu1 %226 }
 0x206   : > { %587 = vrcp.f32 %v227_v38 }
 0x207   : > { %589 = vpow2.f32 %v282_v48 }
 0x20c   : > { %v588_v41 = vpop.eup %587 }
 0x20d   : > { %v229_v42 = vmul.f32 %v588_v41, %v586_v33  ;;  %v396_v50 = vpop.xlane.xlu1 %395  ;;  %v590_v57 = vpop.eup %589 }
 0x20e   : > { %v397_v53 = vsub.f32 %v393_v37, %v396_v50  ;;  %v284_v58 = vsel %vm194_vm0, %v590_v57, 0.0 }
 0x20f   : > { %v230_v43 = vpack.c.bf16 %v229_v42, %v229_v42 }
 0x210   : > { %v398_v55 = vmul.f32 1.442695, %v397_v53 }
 0x211   : > { %538 = vmatmul.msk.bf16.vlgmr.msra.gmra.mxu1 %vm194_vm0, %v230_v43 }
 0x212   : > { %591 = vpow2.f32 %v398_v55 }
 0x218   : > { %v592_v59 = vpop.eup %591 }
 0x219   : > { %v400_v60 = vsel %vm194_vm0, %v592_v59, 0.0 }
 0x221   : > { %541 = vmatmul.msk.bf16.vlgmr.msrb.gmra.mxu1 %vm194_vm0, %v312_v23 }
 0x225   : > { %v291_v61 = vpop.permute.xlu1 %290 }
 0x226   : > { %v296_v62 = vsel %vm236_vm1, %v291_v61, 0 }
 0x227   : > { %305 = vmatpush.bf16.msra.mxu3 %v296_v62 }
 0x22d   : > { %v407_v63 = vpop.permute.xlu1 %406 }
 0x22e   : > { %v412_v0 = vsel %vm236_vm1, %v407_v63, 0 }
 0x22f   : > { %421 = vmatpush.bf16.msrb.mxu2 %v412_v0 }
 0x28e   : > { %v710_v44 = vpop.f32.mrf.mxu1 }
 0x296   : > { %v251_v45 = vpop.f32.mrf.mxu1 }
 0x29e   : > { %v330_v49 = vpop.f32.mrf.mxu1 }
 0x29f   : > { %v334_v51 = vmul.f32 0.35355338, %v330_v49 }
 0x2a1   : > { %v335_v52 = vadd.f32 %v334_v51, %v216_v11 }
 0x2a3   : > { %v336_v54 = vsel %vm194_vm0, %v335_v52, -inf }
 0x2a4   : > { %337 = vmax.xlane.f32.xlu0 %v336_v54 }
 0x2a6   : > { %v332_v56 = vpop.f32.mrf.mxu1 }
 0x2ac   : > { %285 = vadd.xlane.f32.xlu0 %v284_v58 }
 0x2b4   : > { %401 = vadd.xlane.f32.xlu0 %v400_v60 }
 0x317   : > { %v338_v1 = vpop.xlane.xlu0 %337 }
 0x318   : > { %v339_v3 = vsub.f32 %v335_v52, %v338_v1 }
 0x31a   : > { %v340_v4 = vmul.f32 1.442695, %v339_v3 }
 0x31c   : > { %593 = vpow2.f32 %v340_v4 }
 0x31f   : > { %v286_v5 = vpop.xlane.xlu0 %285 }
 0x320   : > { %595 = vrcp.f32 %v286_v5 }
 0x322   : > { %v594_v6 = vpop.eup %593 }
 0x323   : > { %v342_v7 = vsel %vm194_vm0, %v594_v6, 0.0 }
 0x324   : > { %343 = vadd.xlane.f32.xlu0 %v342_v7 }
 0x326   : > { %v596_v8 = vpop.eup %595 }
 0x327   : > { %v402_v9 = vpop.xlane.xlu0 %401  ;;  %v288_v10 = vmul.f32 %v596_v8, %v590_v57 }
 0x328   : > { %597 = vrcp.f32 %v402_v9 }
 0x329   : > { %v289_v11 = vpack.c.bf16 %v288_v10, %v288_v10 }
 0x32b   : > { %540 = vmatmul.msk.bf16.vlgmr.msra.gmra.mxu3 %vm194_vm0, %v289_v11 }
 0x32e   : > { %v598_v12 = vpop.eup %597 }
 0x32f   : > { %v404_v13 = vmul.f32 %v598_v12, %v592_v59 }
 0x331   : > { %v405_v14 = vpack.c.bf16 %v404_v13, %v404_v13 }
 0x333   : > { %544 = vmatmul.msk.bf16.vlgmr.msrb.gmra.mxu2 %vm194_vm0, %v405_v14 }
 0x338   : > { %348 = vrot.lane.b32.xlu0 %v680_v2, %s635_s30 }
 0x397   : > { %v344_v15 = vpop.xlane.xlu0 %343 }
 0x398   : > { %599 = vrcp.f32 %v344_v15 }
 0x39e   : > { %v600_v16 = vpop.eup %599 }
 0x39f   : > { %v346_v17 = vmul.f32 %v600_v16, %v594_v6 }
 0x3a1   : > { %v347_v20 = vpack.c.bf16 %v346_v17, %v346_v17 }
 0x3aa   : > { %v349_v18 = vpop.permute.xlu0 %348 }
 0x3ab   : > { %v354_v19 = vsel %vm236_vm1, %v349_v18, 0 }
 0x3ac   : > { %363 = vmatpush.bf16.msrb.mxu3 %v354_v19 }
 0x3ae   : > { %v307_v21 = vpop.f32.mrf.mxu3 }
 0x3af   : > { %542 = vmatmul.msk.bf16.vlgmr.msrb.gmra.mxu3 %vm194_vm0, %v347_v20  ;;  %428 = vrot.lane.b32.xlu2 %v307_v21, %s636_s3 }
 0x3b6   : > { %v309_v22 = vpop.f32.mrf.mxu3  ;;  %v423_v23 = vpop.f32.mrf.mxu2 }
 0x3be   : > { %v425_v24 = vpop.f32.mrf.mxu2 }
 0x409   : > { %v429_v27 = vpop.permute.xlu2 %428 }
 0x40a   : > { %v439_v28 = vsel %vm194_vm0, %v710_v44, %v429_v27 }
 0x432   : > { %v365_v25 = vpop.f32.mrf.mxu3 }
 0x433   : > { %432 = vrot.lane.b32.xlu1 %v365_v25, %s637_s4 }
 0x43a   : > { %v367_v2 = vpop.f32.mrf.mxu3 }
 0x43b   : > { %436 = vrot.lane.b32.xlu1 %v423_v23, %s638_s5 }
 0x4a5   : > { %v433_v26 = vpop.permute.xlu1 %432 }
 0x4a6   : > { %v441_v29 = vsel %vm440_vm2, %v439_v28, %v433_v26 }
 0x4ad   : > { %v437_v30 = vpop.permute.xlu1 %436 }
 0x4ae   : > { %v443_v31 = vsel %vm442_vm3, %v441_v29, %v437_v30 }
 0x4af   : > { %v444_v32 = vpack.c.bf16 %v443_v31, %v443_v31 }
 0x4b1   : > { %446 = vst.msk [vmem:[%s183_s8] sm:$0xf] %vm445_vm4, %v444_v32 }
 0x4b2 PF: > { %s12_s11 = sadd.s32 1, %s623_s11   ;;  %s742_s9 = smov %s619_s10 }
 0x4b3   : > { %p9_p5 = scmp.ge.s32.totalorder %s12_s11, 4   ;;  %s743_s10 = smov %s745_s12 }
 0x4b5   :  { %11 = sbr.rel (!%p9_p5) target bundleno = 2 (0x2), region = 61 }

// kernel: bert_pretrain_forward.16
= control target key start
LH: loop header
LB: loop body
LE: loop exit
PB: predicated region body
PF: predicated region fallthrough
CT: control target
= control target key end

     0   :  { %vm18_vm0 = vcmask 261120   ;;  %v95_v4 = vmov 32.0   ;;  %s140_s0 = inlined_call_operand.vmem [shape: f32[16,32], index: 0, kind: input, shape index: {}]   ;;  %s141_s1 = inlined_call_operand.vmem [shape: f32[1,32], index: 1, kind: input, shape index: {}]   ;;  %s142_s2 = inlined_call_operand.vmem [shape: f32[1,32], index: 2, kind: input, shape index: {}]   ;;  %s143_s3 = inlined_call_operand.vmem [shape: f32[16,32], index: 3, kind: output, shape index: {}]  }
   0x1   :  { %v14_v0 = vld [vmem:[%s140_s0] sm:$0xff]  ;;  %v15_v2 = vld [vmem:[%s140_s0 + $0x8] sm:$0xff]  ;;  %89 = vrcp.f32 %v95_v4 }
   0x2   :  { %v19_v1 = vsel %vm18_vm0, %v14_v0, 0.0  ;;  %v22_v3 = vsel %vm18_vm0, %v15_v2, 0.0  ;;  %v87_v35 = vld [vmem:[%s141_s1] ss:$0 sm:$0xff] }
   0x3   :  { %20 = vadd.xlane.f32.xlu0 %v19_v1  ;;  %v88_v38 = vld [vmem:[%s142_s2] ss:$0 sm:$0xff] }
   0x7   :  { %v90_v5 = vpop.eup %89 }
   0x8   :  { %v26_v6 = vmul.f32 32.0, %v90_v5  ;;  %vm30_vm1 = vweird.f32 %v90_v5 }
   0xa   :  { %v27_v7 = vsub.f32 1.0, %v26_v6 }
   0xb   :  { %23 = vadd.xlane.f32.xlu0 %v22_v3 }
   0xc   :  { %v28_v8 = vmul.f32 %v90_v5, %v27_v7 }
   0xe   :  { %v29_v9 = vadd.f32 %v90_v5, %v28_v8 }
  0x10   :  { %v31_v10 = vsel %vm30_vm1, %v90_v5, %v29_v9 }
  0x76   :  { %v21_v11 = vpop.xlane.xlu0 %20 }
  0x77   :  { %v32_v12 = vmul.f32 %v31_v10, %v21_v11 }
  0x79   :  { %v34_v13 = vsub.f32 %v14_v0, %v32_v12 }
  0x7b   :  { %v36_v14 = vmul.f32 %v34_v13, %v34_v13 }
  0x7d   :  { %v38_v15 = vsel %vm18_vm0, %v36_v14, 0.0 }
  0x7e   :  { %39 = vadd.xlane.f32.xlu1 %v38_v15  ;;  %v24_v16 = vpop.xlane.xlu0 %23 }
  0x7f   :  { %v33_v17 = vmul.f32 %v31_v10, %v24_v16 }
  0x81   :  { %v35_v18 = vsub.f32 %v15_v2, %v33_v17 }
  0x83   :  { %v37_v19 = vmul.f32 %v35_v18, %v35_v18 }
  0x85   :  { %v41_v20 = vsel %vm18_vm0, %v37_v19, 0.0 }
  0x86   :  { %42 = vadd.xlane.f32.xlu1 %v41_v20 }
  0xf1   :  { %v40_v21 = vpop.xlane.xlu1 %39 }
  0xf2   :  { %v44_v22 = vmul.f32 %v40_v21, %v31_v10 }
  0xf4   :  { %v46_v23 = vadd.f32 1e-12, %v44_v22 }
  0xf6   :  { %91 = vrsqrt.f32 %v46_v23  ;;  %vm54_vm3 = vweird.f32 %v46_v23 }
  0xf9   :  { %v43_v24 = vpop.xlane.xlu1 %42 }
  0xfa   :  { %v45_v25 = vmul.f32 %v43_v24, %v31_v10 }
  0xfc   :  { %v92_v26 = vpop.eup %91  ;;  %v47_v27 = vadd.f32 1e-12, %v45_v25 }
  0xfd   :  { %v49_v28 = vmul.f32 %v92_v26, %v46_v23  ;;  %vm55_vm2 = vweird.f32 %v92_v26 }
  0xfe   :  { %93 = vrsqrt.f32 %v47_v27  ;;  %vm56_vm4 = vmor %vm54_vm3, %vm55_vm2  ;;  %vm64_vm6 = vweird.f32 %v47_v27 }
  0xff   :  { %v50_v29 = vmul.f32 %v92_v26, %v49_v28 }
 0x101   :  { %v51_v30 = vmul.f32 0.5, %v50_v29 }
 0x103   :  { %v52_v31 = vsub.f32 1.5, %v51_v30 }
 0x104   :  { %v94_v32 = vpop.eup %93 }
 0x105   :  { %v53_v33 = vmul.f32 %v92_v26, %v52_v31  ;;  %v59_v34 = vmul.f32 %v94_v32, %v47_v27  ;;  %vm65_vm5 = vweird.f32 %v94_v32 }
 0x106   :  { %vm66_vm7 = vmor %vm64_vm6, %vm65_vm5 }
 0x107   :  { %v57_v36 = vsel %vm56_vm4, %v92_v26, %v53_v33  ;;  %v60_v37 = vmul.f32 %v94_v32, %v59_v34 }
 0x108   :  { %v68_v39 = vmul.f32 %v57_v36, %v34_v13 }
 0x109   :  { %v61_v40 = vmul.f32 0.5, %v60_v37 }
 0x10a   :  { %v73_v41 = vmul.f32 %v87_v35, %v68_v39 }
 0x10b   :  { %v62_v42 = vsub.f32 1.5, %v61_v40 }
 0x10c   :  { %v78_v43 = vadd.f32 %v88_v38, %v73_v41 }
 0x10d   :  { %v63_v44 = vmul.f32 %v94_v32, %v62_v42 }
 0x10e   :  { %80 = vst.msk [vmem:[%s143_s3] sm:$0xff] %vm18_vm0, %v78_v43 }
 0x10f   :  { %v67_v45 = vsel %vm66_vm7, %v94_v32, %v63_v44 }
 0x110   :  { %v69_v46 = vmul.f32 %v67_v45, %v35_v18 }
 0x112   :  { %v74_v47 = vmul.f32 %v87_v35, %v69_v46 }
 0x114   :  { %v79_v48 = vadd.f32 %v88_v38, %v74_v47 }
 0x116   :  { %81 = vst.msk [vmem:[%s143_s3 + $0x8] sm:$0xff] %vm18_vm0, %v79_v48 }

// kernel: bert_pretrain_forward.17
= control target key start
LH: loop header
LB: loop body
LE: loop exit
PB: predicated region body
PF: predicated region fallthrough
CT: control target
= control target key end

     0   :  { %vm19_vm0 = vcmask 785408   ;;  %v99_v1 = vmov 0.0   ;;  %vm43_vm1 = vcmask 261120   ;;  %vm79_vm2 = vcmask 781312   ;;  %s145_s1 = inlined_call_operand.vmem [shape: bf16[32,96], index: 1, kind: input, shape index: {}]   ;;  %s146_s0 = inlined_call_operand.vmem [shape: f32[16,32], index: 0, kind: input, shape index: {}]   ;;  %s147_s2 = inlined_call_operand.vmem [shape: f32[1,96], index: 2, kind: input, shape index: {}]   ;;  %s148_s3 = inlined_call_operand.vmem [shape: bf16[16,96], index: 3, kind: output, shape index: {}]  }
   0x1   :  { %v96_v0 = vld [vmem:[%s145_s1 + $0x8] sm:$0xff]  ;;  %20 = vst.msk [vmem:[#allocation2] sm:$0xff] %vm19_vm0, %v99_v1  ;;  %v95_v2 = vld [vmem:[%s145_s1] sm:$0xff] }
   0x2   :  { %21 = vst.msk [vmem:[#allocation2 + $0x8] sm:$0xff] %vm19_vm0, %v99_v1  ;;  %53 = vmatpush.bf16.msra.mxu0 %v96_v0  ;;  %v24_v3 = vld [vmem:[%s146_s0] sm:$0xff]  ;;  %v25_v4 = vld [vmem:[%s146_s0 + $0x8] sm:$0xff] }
   0x3   :  { %v26_v5 = vpack.c.bf16 %v25_v4, %v24_v3  ;;  %v98_v10 = vld [vmem:[%s147_s2] ss:$0 sm:$0xff] }
   0x6   :  { %54 = vmatpush.bf16.msra.mxu0 %v95_v2 }
   0x8   :  { %v22_v6 = vld [vmem:[#allocation2] sm:$0xff] }
   0x9   :  { %94 = vmatmul.msk.bf16.vlgmr.msra.gmra.mxu0 %vm43_vm1, %v26_v5  ;;  %v23_v9 = vld [vmem:[#allocation2 + $0x8] sm:$0xff] }
  0x86   :  { %v56_v7 = vpop.f32.mrf.mxu0 }
  0x87   :  { %v61_v8 = vadd.f32 %v56_v7, %v22_v6 }
  0x89   :  { %64 = vst.msk [vmem:[#allocation2] sm:$0xff] %vm19_vm0, %v61_v8 }
  0x8e   :  { %v58_v11 = vpop.f32.mrf.mxu0 }
  0x8f   :  { %v62_v12 = vadd.f32 %v58_v11, %v23_v9 }
  0x90   :  { %v69_v13 = vld [vmem:[#allocation2] sm:$0xff] }
  0x91   :  { %v75_v14 = vadd.f32 %v98_v10, %v69_v13  ;;  %65 = vst.msk [vmem:[#allocation2 + $0x8] sm:$0xff] %vm19_vm0, %v62_v12 }
  0x93   :  { %v77_v15 = vpack.c.bf16 %v75_v14, %v75_v14 }
  0x95   :  { %80 = vst.msk [vmem:[%s148_s3] sm:$0xf] %vm79_vm2, %v77_v15 }
  0x98   :  { %v70_v16 = vld [vmem:[#allocation2 + $0x8] sm:$0xff] }
  0x99   :  { %v76_v17 = vadd.f32 %v98_v10, %v70_v16 }
  0x9b   :  { %v78_v18 = vpack.c.bf16 %v76_v17, %v76_v17 }
  0x9d   :  { %81 = vst.msk [vmem:[%s148_s3 + $0x4] sm:$0xf] %vm79_vm2, %v78_v18 }

// kernel: bert_pretrain_forward.19
= control target key start
LH: loop header
LB: loop body
LE: loop exit
PB: predicated region body
PF: predicated region fallthrough
CT: control target
= control target key end

     0   :  { %vm28_vm0 = vcmask 261120   ;;  %v189_v1 = vmov 0.0   ;;  %v190_v21 = vmov 32.0   ;;  %s267_s1 = inlined_call_operand.vmem [shape: bf16[32,32], index: 1, kind: input, shape index: {}]   ;;  %s268_s0 = inlined_call_operand.vmem [shape: bf16[16,32], index: 0, kind: input, shape index: {}]   ;;  %s269_s2 = inlined_call_operand.vmem [shape: f32[1,32], index: 2, kind: input, shape index: {}, may-alias: {2,5}]   ;;  %s270_s3 = inlined_call_operand.vmem [shape: f32[16,32], index: 3, kind: input, shape index: {}]   ;;  %s271_s4 = inlined_call_operand.vmem [shape: f32[1,32], index: 4, kind: input, shape index: {}]   ;;  %s272_s5 = inlined_call_operand.vmem [shape: f32[1,32], index: 5, kind: input, shape index: {}, may-alias: {2,5}]   ;;  %s273_s6 = inlined_call_operand.vmem [shape: f32[16,32], index: 6, kind: output, shape index: {}]  }
   0x1   :  { %v177_v0 = vld [vmem:[%s267_s1 + $0x8] sm:$0xff]  ;;  %29 = vst.msk [vmem:[#allocation2] sm:$0xff] %vm28_vm0, %v189_v1  ;;  %v176_v2 = vld [vmem:[%s267_s1] sm:$0xff]  ;;  %183 = vrcp.f32 %v190_v21 }
   0x2   :  { %30 = vst.msk [vmem:[#allocation2 + $0x8] sm:$0xff] %vm28_vm0, %v189_v1  ;;  %66 = vmatpush.bf16.msra.mxu0 %v177_v0  ;;  %v175_v3 = vld [vmem:[%s268_s0] sm:$0xff]  ;;  %v90_v17 = vld [vmem:[%s270_s3 + $0x8] sm:$0xff] }
   0x3   :  { %v180_v8 = vld [vmem:[%s269_s2] ss:$0 sm:$0xff] }
   0x4   :  { %v89_v12 = vld [vmem:[%s270_s3] sm:$0xff] }
   0x5   :  { %v181_v52 = vld [vmem:[%s271_s4] ss:$0 sm:$0xff] }
   0x6   :  { %67 = vmatpush.bf16.msra.mxu0 %v176_v2  ;;  %v182_v55 = vld [vmem:[%s272_s5] ss:$0 sm:$0xff] }
   0x7   :  { %v184_v22 = vpop.eup %183 }
   0x8   :  { %v31_v4 = vld [vmem:[#allocation2] sm:$0xff]  ;;  %v102_v23 = vmul.f32 32.0, %v184_v22  ;;  %vm106_vm1 = vweird.f32 %v184_v22 }
   0x9   :  { %174 = vmatmul.msk.bf16.vlgmr.msra.gmra.mxu0 %vm28_vm0, %v175_v3  ;;  %v32_v7 = vld [vmem:[#allocation2 + $0x8] sm:$0xff] }
   0xa   :  { %v103_v24 = vsub.f32 1.0, %v102_v23 }
   0xc   :  { %v104_v25 = vmul.f32 %v184_v22, %v103_v24 }
   0xe   :  { %v105_v26 = vadd.f32 %v184_v22, %v104_v25 }
  0x10   :  { %v107_v27 = vsel %vm106_vm1, %v184_v22, %v105_v26 }
  0x86   :  { %v69_v5 = vpop.f32.mrf.mxu0 }
  0x87   :  { %v74_v6 = vadd.f32 %v69_v5, %v31_v4 }
  0x89   :  { %76 = vst.msk [vmem:[#allocation2] sm:$0xff] %vm28_vm0, %v74_v6 }
  0x8e   :  { %v71_v9 = vpop.f32.mrf.mxu0 }
  0x8f   :  { %v75_v10 = vadd.f32 %v71_v9, %v32_v7 }
  0x90   :  { %v81_v11 = vld [vmem:[#allocation2] sm:$0xff] }
  0x91   :  { %77 = vst.msk [vmem:[#allocation2 + $0x8] sm:$0xff] %vm28_vm0, %v75_v10  ;;  %v87_v13 = vadd.f32 %v180_v8, %v81_v11 }
  0x93   :  { %v91_v14 = vadd.f32 %v89_v12, %v87_v13 }
  0x95   :  { %v95_v15 = vsel %vm28_vm0, %v91_v14, 0.0 }
  0x96   :  { %96 = vadd.xlane.f32.xlu0 %v95_v15 }
  0x98   :  { %v82_v16 = vld [vmem:[#allocation2 + $0x8] sm:$0xff] }
  0x99   :  { %v88_v18 = vadd.f32 %v180_v8, %v82_v16 }
  0x9b   :  { %v92_v19 = vadd.f32 %v90_v17, %v88_v18 }
  0x9d   :  { %v98_v20 = vsel %vm28_vm0, %v92_v19, 0.0 }
  0x9e   :  { %99 = vadd.xlane.f32.xlu0 %v98_v20 }
 0x109   :  { %v97_v28 = vpop.xlane.xlu0 %96 }
 0x10a   :  { %v108_v29 = vmul.f32 %v107_v27, %v97_v28 }
 0x10c   :  { %v110_v30 = vsub.f32 %v91_v14, %v108_v29 }
 0x10e   :  { %v112_v31 = vmul.f32 %v110_v30, %v110_v30 }
 0x110   :  { %v114_v32 = vsel %vm28_vm0, %v112_v31, 0.0 }
 0x111   :  { %115 = vadd.xlane.f32.xlu1 %v114_v32  ;;  %v100_v33 = vpop.xlane.xlu0 %99 }
 0x112   :  { %v109_v34 = vmul.f32 %v107_v27, %v100_v33 }
 0x114   :  { %v111_v35 = vsub.f32 %v92_v19, %v109_v34 }
 0x116   :  { %v113_v36 = vmul.f32 %v111_v35, %v111_v35 }
 0x118   :  { %v117_v37 = vsel %vm28_vm0, %v113_v36, 0.0 }
 0x119   :  { %118 = vadd.xlane.f32.xlu1 %v117_v37 }
 0x184   :  { %v116_v38 = vpop.xlane.xlu1 %115 }
 0x185   :  { %v120_v39 = vmul.f32 %v116_v38, %v107_v27 }
 0x187   :  { %v122_v40 = vadd.f32 1e-12, %v120_v39 }
 0x189   :  { %185 = vrsqrt.f32 %v122_v40  ;;  %vm130_vm3 = vweird.f32 %v122_v40 }
 0x18c   :  { %v119_v41 = vpop.xlane.xlu1 %118 }
 0x18d   :  { %v121_v42 = vmul.f32 %v119_v41, %v107_v27 }
 0x18f   :  { %v186_v43 = vpop.eup %185  ;;  %v123_v44 = vadd.f32 1e-12, %v121_v42 }
 0x190   :  { %v125_v45 = vmul.f32 %v186_v43, %v122_v40  ;;  %vm131_vm2 = vweird.f32 %v186_v43 }
 0x191   :  { %187 = vrsqrt.f32 %v123_v44  ;;  %vm132_vm4 = vmor %vm130_vm3, %vm131_vm2  ;;  %vm140_vm6 = vweird.f32 %v123_v44 }
 0x192   :  { %v126_v46 = vmul.f32 %v186_v43, %v125_v45 }
 0x194   :  { %v127_v47 = vmul.f32 0.5, %v126_v46 }
 0x196   :  { %v128_v48 = vsub.f32 1.5, %v127_v47 }
 0x197   :  { %v188_v49 = vpop.eup %187 }
 0x198   :  { %v129_v50 = vmul.f32 %v186_v43, %v128_v48  ;;  %v135_v51 = vmul.f32 %v188_v49, %v123_v44  ;;  %vm141_vm5 = vweird.f32 %v188_v49 }
 0x199   :  { %vm142_vm7 = vmor %vm140_vm6, %vm141_vm5 }
 0x19a   :  { %v133_v53 = vsel %vm132_vm4, %v186_v43, %v129_v50  ;;  %v136_v54 = vmul.f32 %v188_v49, %v135_v51 }
 0x19b   :  { %v144_v56 = vmul.f32 %v133_v53, %v110_v30 }
 0x19c   :  { %v137_v57 = vmul.f32 0.5, %v136_v54 }
 0x19d   :  { %v149_v58 = vmul.f32 %v181_v52, %v144_v56 }
 0x19e   :  { %v138_v59 = vsub.f32 1.5, %v137_v57 }
 0x19f   :  { %v154_v60 = vadd.f32 %v182_v55, %v149_v58 }
 0x1a0   :  { %v139_v61 = vmul.f32 %v188_v49, %v138_v59 }
 0x1a1   :  { %156 = vst.msk [vmem:[%s273_s6] sm:$0xff] %vm28_vm0, %v154_v60 }
 0x1a2   :  { %v143_v62 = vsel %vm142_vm7, %v188_v49, %v139_v61 }
 0x1a3   :  { %v145_v63 = vmul.f32 %v143_v62, %v111_v35 }
 0x1a5   :  { %v150_v0 = vmul.f32 %v181_v52, %v145_v63 }
 0x1a7   :  { %v155_v1 = vadd.f32 %v182_v55, %v150_v0 }
 0x1a9   :  { %157 = vst.msk [vmem:[%s273_s6 + $0x8] sm:$0xff] %vm28_vm0, %v155_v1 }

// kernel: bert_pretrain_forward.20
= control target key start
LH: loop header
LB: loop body
LE: loop exit
PB: predicated region body
PF: predicated region fallthrough
CT: control target
= control target key end

     0   :  { %vm19_vm0 = vcmask 523264   ;;  %v121_v1 = vmov 0.0   ;;  %vm43_vm1 = vcmask 261120   ;;  %vm97_vm2 = vcmask 519168   ;;  %s167_s1 = inlined_call_operand.vmem [shape: bf16[32,64], index: 1, kind: input, shape index: {}]   ;;  %s168_s0 = inlined_call_operand.vmem [shape: f32[16,32], index: 0, kind: input, shape index: {}]   ;;  %s169_s2 = inlined_call_operand.vmem [shape: f32[1,64], index: 2, kind: input, shape index: {}]   ;;  %s170_s3 = inlined_call_operand.vmem [shape: bf16[16,64], index: 3, kind: output, shape index: {}]  }
   0x1   :  { %v114_v0 = vld [vmem:[%s167_s1 + $0x8] sm:$0xff]  ;;  %20 = vst.msk [vmem:[#allocation2] sm:$0xff] %vm19_vm0, %v121_v1  ;;  %v113_v2 = vld [vmem:[%s167_s1] sm:$0xff] }
   0x2   :  { %21 = vst.msk [vmem:[#allocation2 + $0x8] sm:$0xff] %vm19_vm0, %v121_v1  ;;  %53 = vmatpush.bf16.msra.mxu0 %v114_v0  ;;  %v24_v3 = vld [vmem:[%s168_s0] sm:$0xff]  ;;  %v25_v4 = vld [vmem:[%s168_s0 + $0x8] sm:$0xff] }
   0x3   :  { %v26_v5 = vpack.c.bf16 %v25_v4, %v24_v3  ;;  %v116_v10 = vld [vmem:[%s169_s2] ss:$0 sm:$0xff] }
   0x6   :  { %54 = vmatpush.bf16.msra.mxu0 %v113_v2 }
   0x8   :  { %v22_v6 = vld [vmem:[#allocation2] sm:$0xff] }
   0x9   :  { %112 = vmatmul.msk.bf16.vlgmr.msra.gmra.mxu0 %vm43_vm1, %v26_v5  ;;  %v23_v9 = vld [vmem:[#allocation2 + $0x8] sm:$0xff] }
  0x86   :  { %v56_v7 = vpop.f32.mrf.mxu0 }
  0x87   :  { %v61_v8 = vadd.f32 %v56_v7, %v22_v6 }
  0x89   :  { %64 = vst.msk [vmem:[#allocation2] sm:$0xff] %vm19_vm0, %v61_v8 }
  0x8e   :  { %v58_v11 = vpop.f32.mrf.mxu0 }
  0x8f   :  { %v62_v12 = vadd.f32 %v58_v11, %v23_v9 }
  0x90   :  { %v69_v13 = vld [vmem:[#allocation2] sm:$0xff] }
  0x91   :  { %v75_v14 = vadd.f32 %v116_v10, %v69_v13  ;;  %65 = vst.msk [vmem:[#allocation2 + $0x8] sm:$0xff] %vm19_vm0, %v62_v12 }
  0x93   :  { %v79_v15 = vmul.f32 0.044715, %v75_v14  ;;  %v77_v28 = vmul.f32 0.5, %v75_v14 }
  0x95   :  { %v81_v16 = vmul.f32 %v79_v15, %v75_v14 }
  0x97   :  { %v83_v17 = vmul.f32 %v81_v16, %v75_v14 }
  0x98   :  { %v70_v18 = vld [vmem:[#allocation2 + $0x8] sm:$0xff] }
  0x99   :  { %v85_v19 = vadd.f32 %v83_v17, %v75_v14  ;;  %v76_v20 = vadd.f32 %v116_v10, %v70_v18 }
  0x9b   :  { %v87_v21 = vmul.f32 0.7978846, %v85_v19  ;;  %v80_v22 = vmul.f32 0.044715, %v76_v20  ;;  %v78_v33 = vmul.f32 0.5, %v76_v20 }
  0x9d   :  { %117 = vtanh.f32 %v87_v21  ;;  %v82_v23 = vmul.f32 %v80_v22, %v76_v20 }
  0x9f   :  { %v84_v24 = vmul.f32 %v82_v23, %v76_v20 }
  0xa1   :  { %v86_v25 = vadd.f32 %v84_v24, %v76_v20 }
  0xa3   :  { %v118_v26 = vpop.eup %117  ;;  %v88_v27 = vmul.f32 0.7978846, %v86_v25 }
  0xa4   :  { %v91_v29 = vadd.f32 1.0, %v118_v26 }
  0xa5   :  { %119 = vtanh.f32 %v88_v27 }
  0xa6   :  { %v93_v30 = vmul.f32 %v91_v29, %v77_v28 }
  0xa8   :  { %v95_v31 = vpack.c.bf16 %v93_v30, %v93_v30 }
  0xaa   :  { %98 = vst.msk [vmem:[%s170_s3] sm:$0xf] %vm97_vm2, %v95_v31 }
  0xab   :  { %v120_v32 = vpop.eup %119 }
  0xac   :  { %v92_v34 = vadd.f32 1.0, %v120_v32 }
  0xae   :  { %v94_v35 = vmul.f32 %v92_v34, %v78_v33 }
  0xb0   :  { %v96_v36 = vpack.c.bf16 %v94_v35, %v94_v35 }
  0xb2   :  { %99 = vst.msk [vmem:[%s170_s3 + $0x4] sm:$0xf] %vm97_vm2, %v96_v36 }

// kernel: bert_pretrain_forward.21
= control target key start
LH: loop header
LB: loop body
LE: loop exit
PB: predicated region body
PF: predicated region fallthrough
CT: control target
= control target key end

     0   :  { %vm28_vm0 = vcmask 261120   ;;  %v216_v1 = vmov 0.0   ;;  %vm72_vm1 = vcmask 523264   ;;  %v217_v23 = vmov 32.0   ;;  %s299_s1 = inlined_call_operand.vmem [shape: bf16[64,32], index: 1, kind: input, shape index: {}]   ;;  %s300_s0 = inlined_call_operand.vmem [shape: bf16[16,64], index: 0, kind: input, shape index: {}]   ;;  %s301_s2 = inlined_call_operand.vmem [shape: f32[1,32], index: 2, kind: input, shape index: {}, may-alias: {2,5}]   ;;  %s302_s3 = inlined_call_operand.vmem [shape: f32[16,32], index: 3, kind: input, shape index: {}]   ;;  %s303_s4 = inlined_call_operand.vmem [shape: f32[1,32], index: 4, kind: input, shape index: {}]   ;;  %s304_s5 = inlined_call_operand.vmem [shape: f32[1,32], index: 5, kind: input, shape index: {}, may-alias: {2,5}]   ;;  %s305_s6 = inlined_call_operand.vmem [shape: f32[16,32], index: 6, kind: output, shape index: {}]  }
   0x1   :  { %v204_v0 = vld [vmem:[%s299_s1 + $0x18] sm:$0xff]  ;;  %29 = vst.msk [vmem:[#allocation2] sm:$0xff] %vm28_vm0, %v216_v1  ;;  %v203_v2 = vld [vmem:[%s299_s1 + $0x10] sm:$0xff]  ;;  %v202_v3 = vld [vmem:[%s299_s1 + $0x8] sm:$0xff]  ;;  %210 = vrcp.f32 %v217_v23 }
   0x2   :  { %30 = vst.msk [vmem:[#allocation2 + $0x8] sm:$0xff] %vm28_vm0, %v216_v1  ;;  %80 = vmatpush.bf16.msra.mxu0 %v204_v0  ;;  %v201_v4 = vld [vmem:[%s299_s1] sm:$0xff]  ;;  %v107_v19 = vld [vmem:[%s302_s3 + $0x8] sm:$0xff] }
   0x3   :  { %v200_v5 = vld [vmem:[%s300_s0] sm:$0xff] }
   0x4   :  { %v207_v10 = vld [vmem:[%s301_s2] ss:$0 sm:$0xff] }
   0x5   :  { %v106_v14 = vld [vmem:[%s302_s3] sm:$0xff] }
   0x6   :  { %81 = vmatpush.bf16.msra.mxu0 %v203_v2  ;;  %v208_v54 = vld [vmem:[%s303_s4] ss:$0 sm:$0xff] }
   0x7   :  { %v211_v24 = vpop.eup %210  ;;  %v209_v57 = vld [vmem:[%s304_s5] ss:$0 sm:$0xff] }
   0x8   :  { %v31_v6 = vld [vmem:[#allocation2] sm:$0xff]  ;;  %v119_v25 = vmul.f32 32.0, %v211_v24  ;;  %vm123_vm2 = vweird.f32 %v211_v24 }
   0x9   :  { %v32_v9 = vld [vmem:[#allocation2 + $0x8] sm:$0xff] }
   0xa   :  { %82 = vmatpush.bf16.msra.mxu0 %v202_v3  ;;  %v120_v26 = vsub.f32 1.0, %v119_v25 }
   0xc   :  { %v121_v27 = vmul.f32 %v211_v24, %v120_v26 }
   0xe   :  { %83 = vmatpush.bf16.msra.mxu0 %v201_v4  ;;  %v122_v28 = vadd.f32 %v211_v24, %v121_v27 }
  0x10   :  { %v124_v29 = vsel %vm123_vm2, %v211_v24, %v122_v28 }
  0x11   :  { %199 = vmatmul.msk.bf16.vlgmr.msra.gmra.mxu0 %vm72_vm1, %v200_v5 }
  0x8e   :  { %v85_v7 = vpop.f32.mrf.mxu0 }
  0x8f   :  { %v90_v8 = vadd.f32 %v85_v7, %v31_v6 }
  0x91   :  { %93 = vst.msk [vmem:[#allocation2] sm:$0xff] %vm28_vm0, %v90_v8 }
  0x96   :  { %v87_v11 = vpop.f32.mrf.mxu0 }
  0x97   :  { %v91_v12 = vadd.f32 %v87_v11, %v32_v9 }
  0x98   :  { %v98_v13 = vld [vmem:[#allocation2] sm:$0xff] }
  0x99   :  { %94 = vst.msk [vmem:[#allocation2 + $0x8] sm:$0xff] %vm28_vm0, %v91_v12  ;;  %v104_v15 = vadd.f32 %v207_v10, %v98_v13 }
  0x9b   :  { %v108_v16 = vadd.f32 %v106_v14, %v104_v15 }
  0x9d   :  { %v112_v17 = vsel %vm28_vm0, %v108_v16, 0.0 }
  0x9e   :  { %113 = vadd.xlane.f32.xlu0 %v112_v17 }
  0xa0   :  { %v99_v18 = vld [vmem:[#allocation2 + $0x8] sm:$0xff] }
  0xa1   :  { %v105_v20 = vadd.f32 %v207_v10, %v99_v18 }
  0xa3   :  { %v109_v21 = vadd.f32 %v107_v19, %v105_v20 }
  0xa5   :  { %v115_v22 = vsel %vm28_vm0, %v109_v21, 0.0 }
  0xa6   :  { %116 = vadd.xlane.f32.xlu0 %v115_v22 }
 0x111   :  { %v114_v30 = vpop.xlane.xlu0 %113 }
 0x112   :  { %v125_v31 = vmul.f32 %v124_v29, %v114_v30 }
 0x114   :  { %v127_v32 = vsub.f32 %v108_v16, %v125_v31 }
 0x116   :  { %v129_v33 = vmul.f32 %v127_v32, %v127_v32 }
 0x118   :  { %v131_v34 = vsel %vm28_vm0, %v129_v33, 0.0 }
 0x119   :  { %132 = vadd.xlane.f32.xlu1 %v131_v34  ;;  %v117_v35 = vpop.xlane.xlu0 %116 }
 0x11a   :  { %v126_v36 = vmul.f32 %v124_v29, %v117_v35 }
 0x11c   :  { %v128_v37 = vsub.f32 %v109_v21, %v126_v36 }
 0x11e   :  { %v130_v38 = vmul.f32 %v128_v37, %v128_v37 }
 0x120   :  { %v134_v39 = vsel %vm28_vm0, %v130_v38, 0.0 }
 0x121   :  { %135 = vadd.xlane.f32.xlu1 %v134_v39 }
 0x18c   :  { %v133_v40 = vpop.xlane.xlu1 %132 }
 0x18d   :  { %v137_v41 = vmul.f32 %v133_v40, %v124_v29 }
 0x18f   :  { %v139_v42 = vadd.f32 1e-12, %v137_v41 }
 0x191   :  { %212 = vrsqrt.f32 %v139_v42  ;;  %vm147_vm4 = vweird.f32 %v139_v42 }
 0x194   :  { %v136_v43 = vpop.xlane.xlu1 %135 }
 0x195   :  { %v138_v44 = vmul.f32 %v136_v43, %v124_v29 }
 0x197   :  { %v213_v45 = vpop.eup %212  ;;  %v140_v46 = vadd.f32 1e-12, %v138_v44 }
 0x198   :  { %v142_v47 = vmul.f32 %v213_v45, %v139_v42  ;;  %vm148_vm3 = vweird.f32 %v213_v45 }
 0x199   :  { %214 = vrsqrt.f32 %v140_v46  ;;  %vm149_vm5 = vmor %vm147_vm4, %vm148_vm3  ;;  %vm157_vm7 = vweird.f32 %v140_v46 }
 0x19a   :  { %v143_v48 = vmul.f32 %v213_v45, %v142_v47 }
 0x19c   :  { %v144_v49 = vmul.f32 0.5, %v143_v48 }
 0x19e   :  { %v145_v50 = vsub.f32 1.5, %v144_v49 }
 0x19f   :  { %v215_v51 = vpop.eup %214 }
 0x1a0   :  { %v146_v52 = vmul.f32 %v213_v45, %v145_v50  ;;  %v152_v53 = vmul.f32 %v215_v51, %v140_v46  ;;  %vm158_vm6 = vweird.f32 %v215_v51 }
 0x1a1   :  { %vm159_vm8 = vmor %vm157_vm7, %vm158_vm6 }
 0x1a2   :  { %v150_v55 = vsel %vm149_vm5, %v213_v45, %v146_v52  ;;  %v153_v56 = vmul.f32 %v215_v51, %v152_v53 }
 0x1a3   :  { %v161_v58 = vmul.f32 %v150_v55, %v127_v32 }
 0x1a4   :  { %v154_v59 = vmul.f32 0.5, %v153_v56 }
 0x1a5   :  { %v166_v60 = vmul.f32 %v208_v54, %v161_v58 }
 0x1a6   :  { %v155_v61 = vsub.f32 1.5, %v154_v59 }
 0x1a7   :  { %v171_v62 = vadd.f32 %v209_v57, %v166_v60 }
 0x1a8   :  { %v156_v63 = vmul.f32 %v215_v51, %v155_v61 }
 0x1a9   :  { %173 = vst.msk [vmem:[%s305_s6] sm:$0xff] %vm28_vm0, %v171_v62 }
 0x1aa   :  { %v160_v0 = vsel %vm159_vm8, %v215_v51, %v156_v63 }
 0x1ab   :  { %v162_v1 = vmul.f32 %v160_v0, %v128_v37 }
 0x1ad   :  { %v167_v2 = vmul.f32 %v208_v54, %v162_v1 }
 0x1af   :  { %v172_v3 = vadd.f32 %v209_v57, %v167_v2 }
 0x1b1   :  { %174 = vst.msk [vmem:[%s305_s6 + $0x8] sm:$0xff] %vm28_vm0, %v172_v3 }

// kernel: bert_pretrain_forward.28
= control target key start
LH: loop header
LB: loop body
LE: loop exit
PB: predicated region body
PF: predicated region fallthrough
CT: control target
= control target key end

     0   :  { %vm19_vm0 = vcmask 261120   ;;  %v97_v1 = vmov 0.0   ;;  %s137_s1 = inlined_call_operand.vmem [shape: bf16[32,32], index: 1, kind: input, shape index: {}]   ;;  %s138_s0 = inlined_call_operand.vmem [shape: f32[8,32], index: 0, kind: input, shape index: {}]   ;;  %s139_s2 = inlined_call_operand.vmem [shape: f32[1,32], index: 2, kind: input, shape index: {}]   ;;  %s140_s3 = inlined_call_operand.vmem [shape: f32[8,32], index: 3, kind: output, shape index: {}]  }
   0x1   :  { %v92_v0 = vld [vmem:[%s137_s1 + $0x8] sm:$0xff]  ;;  %20 = vst.msk [vmem:[#allocation2] sm:$0xff] %vm19_vm0, %v97_v1  ;;  %v91_v2 = vld [vmem:[%s137_s1] sm:$0xff] }
   0x2   :  { %50 = vmatpush.bf16.msra.mxu0 %v92_v0  ;;  %v22_v3 = vld [vmem:[%s138_s0] sm:$0xff] }
   0x3   :  { %v23_v4 = vpack.c.bf16 %v22_v3, %v22_v3  ;;  %v94_v8 = vld [vmem:[%s139_s2] ss:$0 sm:$0xff] }
   0x6   :  { %51 = vmatpush.bf16.msra.mxu0 %v91_v2 }
   0x8   :  { %v21_v5 = vld [vmem:[#allocation2] sm:$0xff] }
   0x9   :  { %90 = vmatmul.msk.bf16.vlgmr.msra.gmra.mxu0 %vm19_vm0, %v23_v4 }
  0x86   :  { %v53_v6 = vpop.f32.mrf.mxu0 }
  0x87   :  { %v57_v7 = vadd.f32 %v53_v6, %v21_v5 }
  0x89   :  { %58 = vst.msk [vmem:[#allocation2] sm:$0xff] %vm19_vm0, %v57_v7 }
  0x8e   :  { %v55_v9 = vpop.f32.mrf.mxu0 }
  0x90   :  { %v62_v10 = vld [vmem:[#allocation2] sm:$0xff] }
  0x91   :  { %v67_v11 = vadd.f32 %v94_v8, %v62_v10 }
  0x93   :  { %v69_v12 = vmul.f32 0.044715, %v67_v11  ;;  %v68_v18 = vmul.f32 0.5, %v67_v11 }
  0x95   :  { %v70_v13 = vmul.f32 %v69_v12, %v67_v11 }
  0x97   :  { %v71_v14 = vmul.f32 %v70_v13, %v67_v11 }
  0x99   :  { %v72_v15 = vadd.f32 %v71_v14, %v67_v11 }
  0x9b   :  { %v73_v16 = vmul.f32 0.7978846, %v72_v15 }
  0x9d   :  { %95 = vtanh.f32 %v73_v16 }
  0xa3   :  { %v96_v17 = vpop.eup %95 }
  0xa4   :  { %v75_v19 = vadd.f32 1.0, %v96_v17 }
  0xa6   :  { %v76_v20 = vmul.f32 %v75_v19, %v68_v18 }
  0xa8   :  { %77 = vst.msk [vmem:[%s140_s3] sm:$0xff] %vm19_vm0, %v76_v20 }

// kernel: bert_pretrain_forward.29
= control target key start
LH: loop header
LB: loop body
LE: loop exit
PB: predicated region body
PF: predicated region fallthrough
CT: control target
= control target key end

     0   :  { %vm17_vm0 = vcmask 261120   ;;  %v67_v2 = vmov 32.0   ;;  %s103_s0 = inlined_call_operand.vmem [shape: f32[8,32], index: 0, kind: input, shape index: {}]   ;;  %s104_s1 = inlined_call_operand.vmem [shape: f32[1,32], index: 1, kind: input, shape index: {}]   ;;  %s105_s2 = inlined_call_operand.vmem [shape: f32[1,32], index: 2, kind: input, shape index: {}]   ;;  %s106_s3 = inlined_call_operand.vmem [shape: f32[8,32], index: 3, kind: output, shape index: {}]  }
   0x1   :  { %v14_v0 = vld [vmem:[%s103_s0] sm:$0xff]  ;;  %63 = vrcp.f32 %v67_v2 }
   0x2   :  { %v18_v1 = vsel %vm17_vm0, %v14_v0, 0.0  ;;  %v61_v23 = vld [vmem:[%s104_s1] ss:$0 sm:$0xff] }
   0x3   :  { %19 = vadd.xlane.f32.xlu0 %v18_v1  ;;  %v62_v25 = vld [vmem:[%s105_s2] ss:$0 sm:$0xff] }
   0x7   :  { %v64_v3 = vpop.eup %63 }
   0x8   :  { %v22_v4 = vmul.f32 32.0, %v64_v3  ;;  %vm26_vm1 = vweird.f32 %v64_v3 }
   0xa   :  { %v23_v5 = vsub.f32 1.0, %v22_v4 }
   0xc   :  { %v24_v6 = vmul.f32 %v64_v3, %v23_v5 }
   0xe   :  { %v25_v7 = vadd.f32 %v64_v3, %v24_v6 }
  0x10   :  { %v27_v8 = vsel %vm26_vm1, %v64_v3, %v25_v7 }
  0x76   :  { %v20_v9 = vpop.xlane.xlu0 %19 }
  0x77   :  { %v28_v10 = vmul.f32 %v27_v8, %v20_v9 }
  0x79   :  { %v29_v11 = vsub.f32 %v14_v0, %v28_v10 }
  0x7b   :  { %v30_v12 = vmul.f32 %v29_v11, %v29_v11 }
  0x7d   :  { %v31_v13 = vsel %vm17_vm0, %v30_v12, 0.0 }
  0x7e   :  { %32 = vadd.xlane.f32.xlu0 %v31_v13 }
  0xf1   :  { %v33_v14 = vpop.xlane.xlu0 %32 }
  0xf2   :  { %v34_v15 = vmul.f32 %v33_v14, %v27_v8 }
  0xf4   :  { %v35_v16 = vadd.f32 1e-12, %v34_v15 }
  0xf6   :  { %65 = vrsqrt.f32 %v35_v16  ;;  %vm42_vm3 = vweird.f32 %v35_v16 }
  0xfc   :  { %v66_v17 = vpop.eup %65 }
  0xfd   :  { %v37_v18 = vmul.f32 %v66_v17, %v35_v16  ;;  %vm43_vm2 = vweird.f32 %v66_v17 }
  0xfe   :  { %vm44_vm4 = vmor %vm42_vm3, %vm43_vm2 }
  0xff   :  { %v38_v19 = vmul.f32 %v66_v17, %v37_v18 }
 0x101   :  { %v39_v20 = vmul.f32 0.5, %v38_v19 }
 0x103   :  { %v40_v21 = vsub.f32 1.5, %v39_v20 }
 0x105   :  { %v41_v22 = vmul.f32 %v66_v17, %v40_v21 }
 0x107   :  { %v45_v24 = vsel %vm44_vm4, %v66_v17, %v41_v22 }
 0x108   :  { %v46_v26 = vmul.f32 %v45_v24, %v29_v11 }
 0x10a   :  { %v50_v27 = vmul.f32 %v61_v23, %v46_v26 }
 0x10c   :  { %v54_v28 = vadd.f32 %v62_v25, %v50_v27 }
 0x10e   :  { %55 = vst.msk [vmem:[%s106_s3] sm:$0xff] %vm17_vm0, %v54_v28 }

// kernel: bert_pretrain_forward.31
= control target key start
LH: loop header
LB: loop body
LE: loop exit
PB: predicated region body
PF: predicated region fallthrough
CT: control target
= control target key end

     0   :  { %vm20_vm0 = vcmask 9216   ;;  %s167_s0 = inlined_call_operand.vmem [shape: f32[2,32], index: 0, kind: input, shape index: {}]   ;;  %s168_s1 = inlined_call_operand.vmem [shape: bf16[32,2], index: 1, kind: input, shape index: {}]   ;;  %s169_s2 = inlined_call_operand.vmem [shape: f32[1,2], index: 2, kind: input, shape index: {}]   ;;  %s170_s3 = inlined_call_operand.hbm [shape: f32[2,2], index: 3, kind: output, shape index: {}]  }
   0x1   :  { %v97_v0 = vld [vmem:[%s168_s1 + $0x8] sm:$0xff] }
   0x2   :  { %8 = vsyncpa [#allocation4], 0  ;;  %51 = vmatpush.bf16.msra.mxu0 %v97_v0  ;;  %v96_v1 = vld [vmem:[%s168_s1] sm:$0xff]  ;;  %v127_v3 = vmov 0.0   ;;  %vm41_vm1 = vcmask 261120   ;;  %s128_s1 = smov [#allocation3]  }
   0x3   :  { %v23_v2 = vld [vmem:[%s167_s0] sm:$0x3]  ;;  %21 = vst.msk [vmem:[#allocation2] sm:$0x3] %vm20_vm0, %v127_v3  ;;  %s76_s20 = sshll.u32 %s128_s1, 4  ;;  %s78_s22 = sshll.u32 %s170_s3, 4  ;;  %s77_s20 = int_to_ptr.vmem [resolvable:$true] %s76_s20  ;;  %s79_s22 = int_to_ptr.hbm [resolvable:$true] %s78_s22 }
   0x4   :  { %v24_v4 = vpack.c.bf16 %v23_v2, %v23_v2  ;;  %v100_v8 = vld [vmem:[%s169_s2] ss:$0 sm:$0xff] }
   0x6   :  { %52 = vmatpush.bf16.msra.mxu0 %v96_v1 }
   0x9   :  { %95 = vmatmul.msk.bf16.vlgmr.msra.gmra.mxu0 %vm41_vm1, %v24_v4 }
   0xa   :  { %v22_v5 = vld [vmem:[#allocation2] sm:$0x3] }
  0x86   :  { %v54_v6 = vpop.f32.mrf.mxu0 }
  0x87   :  { %v58_v7 = vadd.f32 %v54_v6, %v22_v5 }
  0x89   :  { %60 = vst.msk [vmem:[#allocation2] sm:$0x3] %vm20_vm0, %v58_v7 }
  0x8e   :  { %v56_v9 = vpop.f32.mrf.mxu0 }
  0x90   :  { %v64_v10 = vld [vmem:[#allocation2] sm:$0x3] }
  0x91   :  { %v69_v11 = vadd.f32 %v100_v8, %v64_v10 }
  0x93   :  { %70 = vst.msk [vmem:[#allocation3] sm:$0x3] %vm20_vm0, %v69_v11 }
  0x94   :  { %81 = dma.vmem_to_hbm [thread:$0]  %s77_s20, 32, %s79_s22, [#allocation4]  }
  0x95   :  { %125 = dma.done.wait [#allocation4], 32  }
  0x96   :  { %126 = vsyncadd [#allocation4], 4294967264 }
  0x97   :  { %86 = vsyncpa [#allocation4], 1 }

// kernel: bert_pretrain_forward.30
= control target key start
LH: loop header
LB: loop body
LE: loop exit
PB: predicated region body
PF: predicated region fallthrough
CT: control target
= control target key end

     0   :  { %vm77_vm0 = vcmask 261120   ;;  %s300_s1 = inlined_call_operand.vmem [shape: bf16[32,512], index: 1, kind: input, shape index: {}]   ;;  %s301_s0 = inlined_call_operand.vmem [shape: f32[8,32], index: 0, kind: input, shape index: {}]   ;;  %s302_s2 = inlined_call_operand.vmem [shape: f32[1,512], index: 2, kind: input, shape index: {}]   ;;  %s303_s3 = inlined_call_operand.vmem [shape: f32[8,512], index: 3, kind: output, shape index: {}]  }
   0x1   :  { %v188_v0 = vld [vmem:[%s300_s1 + $0x20] sm:$0xf]  ;;  %v212_v1 = vld [vmem:[%s300_s1 + $0x2c] sm:$0xf0]  ;;  %v210_v2 = vld [vmem:[%s300_s1 + $0x24] sm:$0xf] }
   0x2   :  { %v189_v3 = vor.u32 %v212_v1, %v188_v0  ;;  %v190_v4 = vld [vmem:[%s300_s1 + $0x30] sm:$0xf0]  ;;  %v196_v5 = vld [vmem:[%s300_s1 + $0x28] sm:$0xf]  ;;  %v213_v6 = vld [vmem:[%s300_s1 + $0x34] sm:$0xf0] }
   0x3   :  { %v193_v7 = vor.u32 %v210_v2, %v190_v4  ;;  %v197_v8 = vor.u32 %v213_v6, %v196_v5  ;;  %v211_v9 = vld [vmem:[%s300_s1 + $0x2c] sm:$0xf]  ;;  %v198_v10 = vld [vmem:[%s300_s1 + $0x38] sm:$0xf0]  ;;  %v172_v11 = vld [vmem:[%s300_s1] sm:$0xf] }
   0x4   :  { %87 = vmatpush.bf16.msra.mxu0 %v189_v3  ;;  %v201_v12 = vor.u32 %v211_v9, %v198_v10  ;;  %v208_v13 = vld [vmem:[%s300_s1 + $0xc] sm:$0xf0]  ;;  %v206_v14 = vld [vmem:[%s300_s1 + $0x4] sm:$0xf]  ;;  %v174_v15 = vld [vmem:[%s300_s1 + $0x10] sm:$0xf0] }
   0x5   :  { %100 = vmatpush.bf16.msra.mxu1 %v193_v7  ;;  %113 = vmatpush.bf16.msra.mxu2 %v197_v8  ;;  %v173_v16 = vor.u32 %v208_v13, %v172_v11  ;;  %v177_v17 = vor.u32 %v206_v14, %v174_v15  ;;  %v180_v18 = vld [vmem:[%s300_s1 + $0x8] sm:$0xf]  ;;  %v209_v19 = vld [vmem:[%s300_s1 + $0x14] sm:$0xf0]  ;;  %v207_v20 = vld [vmem:[%s300_s1 + $0xc] sm:$0xf] }
   0x6   :  { %126 = vmatpush.bf16.msra.mxu3 %v201_v12  ;;  %v181_v21 = vor.u32 %v209_v19, %v180_v18  ;;  %v182_v22 = vld [vmem:[%s300_s1 + $0x18] sm:$0xf0]  ;;  %v27_v23 = vld [vmem:[%s301_s0] sm:$0xff] }
   0x7   :  { %v185_v24 = vor.u32 %v207_v20, %v182_v22  ;;  %v28_v25 = vpack.c.bf16 %v27_v23, %v27_v23  ;;  %v148_v26 = vld [vmem:[%s302_s2] sm:$0xf] }
   0x8   :  { %88 = vmatpush.bf16.msra.mxu0 %v173_v16  ;;  %v150_v27 = vperm.slane %v148_v26, 0  ;;  %v151_v28 = vperm.slane %v148_v26, 1  ;;  %v152_v33 = vperm.slane %v148_v26, 2  ;;  %v153_v34 = vperm.slane %v148_v26, 3 }
   0x9   :  { %101 = vmatpush.bf16.msra.mxu1 %v177_v17  ;;  %114 = vmatpush.bf16.msra.mxu2 %v181_v21 }
   0xa   :  { %127 = vmatpush.bf16.msra.mxu3 %v185_v24 }
   0xb   :  { %202 = vmatmul.msk.bf16.vlgmr.msra.gmra.mxu0 %vm77_vm0, %v28_v25 }
   0xc   :  { %203 = vmatmul.msk.bf16.vlgmr.msra.gmra.mxu1 %vm77_vm0, %v28_v25  ;;  %204 = vmatmul.msk.bf16.vlgmr.msra.gmra.mxu2 %vm77_vm0, %v28_v25 }
   0xd   :  { %205 = vmatmul.msk.bf16.vlgmr.msra.gmra.mxu3 %vm77_vm0, %v28_v25 }
  0x88   :  { %v90_v29 = vpop.f32.mrf.mxu0 }
  0x89   :  { %v158_v30 = vadd.f32 %v150_v27, %v90_v29  ;;  %v103_v31 = vpop.f32.mrf.mxu1 }
  0x8a   :  { %v159_v32 = vadd.f32 %v151_v28, %v103_v31 }
  0x8b   :  { %162 = vst [vmem:[%s303_s3] sm:$0xff] %v158_v30 }
  0x8c   :  { %163 = vst [vmem:[%s303_s3 + $0x8] sm:$0xff] %v159_v32 }
  0x8f   :  { %v116_v35 = vpop.f32.mrf.mxu2 }
  0x90   :  { %v160_v36 = vadd.f32 %v152_v33, %v116_v35  ;;  %v129_v37 = vpop.f32.mrf.mxu3  ;;  %v92_v38 = vpop.f32.mrf.mxu0 }
  0x91   :  { %v161_v39 = vadd.f32 %v153_v34, %v129_v37  ;;  %v105_v40 = vpop.f32.mrf.mxu1 }
  0x92   :  { %164 = vst [vmem:[%s303_s3 + $0x10] sm:$0xff] %v160_v36 }
  0x93   :  { %165 = vst [vmem:[%s303_s3 + $0x18] sm:$0xff] %v161_v39 }
  0x97   :  { %v118_v41 = vpop.f32.mrf.mxu2 }
  0x98   :  { %v131_v42 = vpop.f32.mrf.mxu3 }

// kernel: bert_pretrain_forward.27
= control target key start
LH: loop header
LB: loop body
LE: loop exit
PB: predicated region body
PF: predicated region fallthrough
CT: control target
= control target key end

     0   :  { %vm19_vm0 = vcmask 254976   ;;  %v90_v1 = vmov 0.0   ;;  %vm40_vm1 = vcmask 261120   ;;  %s129_s1 = inlined_call_operand.vmem [shape: bf16[32,32], index: 1, kind: input, shape index: {}]   ;;  %s130_s0 = inlined_call_operand.vmem [shape: f32[2,32], index: 0, kind: input, shape index: {}]   ;;  %s131_s2 = inlined_call_operand.vmem [shape: f32[1,32], index: 2, kind: input, shape index: {}]   ;;  %s132_s3 = inlined_call_operand.vmem [shape: f32[2,32], index: 3, kind: output, shape index: {}]  }
   0x1   :  { %v85_v0 = vld [vmem:[%s129_s1 + $0x8] sm:$0xff]  ;;  %20 = vst.msk [vmem:[#allocation2] sm:$0x3] %vm19_vm0, %v90_v1  ;;  %v84_v2 = vld [vmem:[%s129_s1] sm:$0xff] }
   0x2   :  { %50 = vmatpush.bf16.msra.mxu0 %v85_v0  ;;  %v22_v3 = vld [vmem:[%s130_s0] sm:$0x3] }
   0x3   :  { %v23_v4 = vpack.c.bf16 %v22_v3, %v22_v3  ;;  %v87_v8 = vld [vmem:[%s131_s2] ss:$0 sm:$0xff] }
   0x6   :  { %51 = vmatpush.bf16.msra.mxu0 %v84_v2 }
   0x8   :  { %v21_v5 = vld [vmem:[#allocation2] sm:$0x3] }
   0x9   :  { %83 = vmatmul.msk.bf16.vlgmr.msra.gmra.mxu0 %vm40_vm1, %v23_v4 }
  0x86   :  { %v53_v6 = vpop.f32.mrf.mxu0 }
  0x87   :  { %v57_v7 = vadd.f32 %v53_v6, %v21_v5 }
  0x89   :  { %59 = vst.msk [vmem:[#allocation2] sm:$0x3] %vm19_vm0, %v57_v7 }
  0x8e   :  { %v55_v9 = vpop.f32.mrf.mxu0 }
  0x90   :  { %v63_v10 = vld [vmem:[#allocation2] sm:$0x3] }
  0x91   :  { %v68_v11 = vadd.f32 %v87_v8, %v63_v10 }
  0x93   :  { %88 = vtanh.f32 %v68_v11 }
  0x99   :  { %v89_v12 = vpop.eup %88 }
  0x9a   :  { %70 = vst.msk [vmem:[%s132_s3] sm:$0x3] %vm19_vm0, %v89_v12 }

</bundles_post_ra>
